<compile_context>
chip_gen: v7x
topology: tpu7x:2x2x1
jax: 0.10.0
libtpu: 0.0.40
codegen_flags: <defaults>
</compile_context>

<pallas_src>
import jax
import jax.numpy as jnp
from jax.experimental import pallas as pl
from jax.experimental.pallas import tpu as pltpu

LANE = 128


def _round_up(x, m):
    return (x + m - 1) // m * m


# ----------------------------------------------------------------------------
# Kernel 1: fused backbone (3x3 SAME conv via in-kernel im2col, + ReLU) and
#           rvi_module (1x1 conv / linear projection + ReLU).
#           One grid step per batch element (parallel across TensorCores).
# ----------------------------------------------------------------------------
def _backbone_rvi_kernel(xp_ref, w1_ref, b1_ref, w2_ref, b2_ref, vi_ref):
    _, hp, wp, cin = xp_ref.shape          # padded image block [1, H+2, W+2, Cin]
    h, w = hp - 2, wp - 2
    hw = h * w
    cfp = w1_ref.shape[2]                  # lane-padded feature channels (128*k)

    # 3x3 conv as 9 accumulated matmuls over ref-sliced taps (no HBM im2col).
    acc = jnp.zeros((hw, cfp), jnp.float32)
    for tap_idx in range(9):
        dh, dw = divmod(tap_idx, 3)
        tap = xp_ref[0, dh:dh + h, dw:dw + w, :].reshape(hw, cin)
        acc = acc + jnp.dot(tap, w1_ref[tap_idx],
                            preferred_element_type=jnp.float32)
    ve = jnp.maximum(acc + b1_ref[...], 0.0)          # [HW, Cfp] f32, VMEM only

    # rvi 1x1 projection + ReLU (bf16 operands, f32 accumulation).
    vi = jnp.dot(ve.astype(jnp.bfloat16), w2_ref[...],
                 preferred_element_type=jnp.float32)
    vi = jnp.maximum(vi + b2_ref[...], 0.0)
    vi_ref[0] = vi.astype(vi_ref.dtype)               # lane-dense bf16 store


def backbone_rvi(x_nhwc, w1, b1, w2, b2):
    """x_nhwc: [B, H, W, Cin] f32 -> vi feature map [B, H*W, Cfp] bf16."""
    B, H, W, Cin = x_nhwc.shape
    Cfp = w1.shape[2]
    xp = jnp.pad(x_nhwc, ((0, 0), (1, 1), (1, 1), (0, 0)))   # SAME padding

    return pl.pallas_call(
        _backbone_rvi_kernel,
        out_shape=jax.ShapeDtypeStruct((B, H * W, Cfp), jnp.bfloat16),
        grid=(B,),
        in_specs=[
            pl.BlockSpec((1, H + 2, W + 2, Cin), lambda b: (b, 0, 0, 0)),
            pl.BlockSpec((9, Cin, Cfp), lambda b: (0, 0, 0)),
            pl.BlockSpec((1, Cfp), lambda b: (0, 0)),
            pl.BlockSpec((Cfp, Cfp), lambda b: (0, 0)),
            pl.BlockSpec((1, Cfp), lambda b: (0, 0)),
        ],
        out_specs=pl.BlockSpec((1, H * W, Cfp), lambda b: (b, 0, 0)),
        compiler_params=pltpu.CompilerParams(
            dimension_semantics=("parallel",),
            # Keep scoped VMEM comfortably below v7x's 64 MiB physical VMEM.
            vmem_limit_bytes=48 * 1024 * 1024),
    )(xp, w1, b1, w2, b2)


# ----------------------------------------------------------------------------
# Kernel 2: recognition head — cross-attention of label embeddings over the
#           view-invariant spatial feature map, then projection to num_chars.
#           Several batch elements per grid step; attention map not written.
# ----------------------------------------------------------------------------
def _recognition_kernel(emb_ref, feat_ref, wq_ref, wkv_ref, wo_ref, bo_ref,
                        logits_ref):
    bb, t, d = emb_ref.shape               # [Bb, T, D] f32
    _, hw, cfp = feat_ref.shape            # [Bb, HW, Cfp] bf16
    ncp = wo_ref.shape[1]                  # lane-padded num_chars

    # Q projection (1/sqrt(D) scale already folded into wq at init).
    q = jnp.dot(emb_ref[...].reshape(bb * t, d), wq_ref[...],
                preferred_element_type=jnp.float32)
    q = q.reshape(bb, t, cfp).astype(jnp.bfloat16)

    # Fused K/V projection: one matmul against [Cfp, 2*Cfp].
    kv = jnp.dot(feat_ref[...].reshape(bb * hw, cfp), wkv_ref[...],
                 preferred_element_type=jnp.float32).reshape(bb, hw, 2 * cfp)
    k = kv[:, :, :cfp].astype(jnp.bfloat16)
    v = kv[:, :, cfp:].astype(jnp.bfloat16)

    scores = jnp.einsum('btf,bhf->bth', q, k,
                        preferred_element_type=jnp.float32)   # [Bb, T, HW]
    m = jnp.max(scores, axis=-1, keepdims=True)
    e = jnp.exp(scores - m)
    denom = jnp.sum(e, axis=-1, keepdims=True)
    attn = e * pl.reciprocal(denom, approx=True)

    ctx = jnp.einsum('bth,bhf->btf', attn.astype(jnp.bfloat16), v,
                     preferred_element_type=jnp.float32)      # [Bb, T, Cfp]
    logits = jnp.dot(ctx.reshape(bb * t, cfp).astype(jnp.bfloat16), wo_ref[...],
                     preferred_element_type=jnp.float32) + bo_ref[...]
    logits_ref[...] = logits.reshape(bb, t, ncp)
    # TODO(synk): attention_map is intentionally not emitted (discarded on the
    # eval path); add a flagged second output if the training path is needed.


def recognition_head(emb, vi_feat_pad, wq, wkv, wo, bo, *, block_b=8):
    B, T, D = emb.shape
    _, HW, Cfp = vi_feat_pad.shape
    NCp = wo.shape[1]

    bb = min(B, block_b)
    while B % bb:                          # pick a batch block that divides B
        bb -= 1

    return pl.pallas_call(
        _recognition_kernel,
        out_shape=jax.ShapeDtypeStruct((B, T, NCp), jnp.float32),
        grid=(B // bb,),
        in_specs=[
            pl.BlockSpec((bb, T, D), lambda i: (i, 0, 0)),
            pl.BlockSpec((bb, HW, Cfp), lambda i: (i, 0, 0)),
            pl.BlockSpec((D, Cfp), lambda i: (0, 0)),
            pl.BlockSpec((Cfp, 2 * Cfp), lambda i: (0, 0)),
            pl.BlockSpec((Cfp, NCp), lambda i: (0, 0)),
            pl.BlockSpec((1, NCp), lambda i: (0, 0)),
        ],
        out_specs=pl.BlockSpec((bb, T, NCp), lambda i: (i, 0, 0)),
        compiler_params=pltpu.CompilerParams(
            dimension_semantics=("parallel",),
            vmem_limit_bytes=48 * 1024 * 1024),
    )(emb, vi_feat_pad, wq, wkv, wo, bo)


# ----------------------------------------------------------------------------
# Glue: parameter construction (lane-padded, bf16 where useful) and forward.
# ----------------------------------------------------------------------------
def init_params(key, *, c_in=3, c_feat=32, embed_dim=32, num_chars=40):
    cfp = _round_up(c_feat, LANE)
    ncp = _round_up(num_chars, LANE)
    ks = jax.random.split(key, 7)
    s = 0.05

    def pad_to(a, shape):
        out = jnp.zeros(shape, a.dtype)
        return out.at[tuple(slice(0, n) for n in a.shape)].set(a)

    w_conv = s * jax.random.normal(ks[0], (9, c_in, c_feat), jnp.float32)
    w_rvi = s * jax.random.normal(ks[1], (c_feat, c_feat), jnp.float32)
    embed = s * jax.random.normal(ks[2], (num_chars, embed_dim), jnp.float32)
    wq = s * jax.random.normal(ks[3], (embed_dim, c_feat), jnp.float32)
    wk = s * jax.random.normal(ks[4], (c_feat, c_feat), jnp.float32)
    wv = s * jax.random.normal(ks[5], (c_feat, c_feat), jnp.float32)
    wo = s * jax.random.normal(ks[6], (c_feat, num_chars), jnp.float32)

    wkv = jnp.concatenate([pad_to(wk, (cfp, cfp)), pad_to(wv, (cfp, cfp))],
                          axis=1)

    return {
        "w_conv": pad_to(w_conv, (9, c_in, cfp)),                    # f32
        "b_conv": jnp.zeros((1, cfp), jnp.float32),
        "w_rvi": pad_to(w_rvi, (cfp, cfp)).astype(jnp.bfloat16),
        "b_rvi": jnp.zeros((1, cfp), jnp.float32),
        "embed": embed,                                              # f32
        # attention scale 1/sqrt(embed_dim) folded into wq:
        "wq": pad_to(wq, (embed_dim, cfp)) / (embed_dim ** 0.5),
        "wkv": wkv.astype(jnp.bfloat16),
        "wo": pad_to(wo, (cfp, ncp)).astype(jnp.bfloat16),
        "bo": jnp.zeros((1, ncp), jnp.float32),
        "c_feat": c_feat,
        "num_chars": num_chars,
    }


def vinet_forward(params, images_nchw, labels_length, labels_ids,
                  vi_conv_feature=None):
    """Eval-path VINet.forward.

    images_nchw: [B, Cin, H, W] float32   (PyTorch NCHW convention)
    labels_ids : [B, T] int32
    returns {'predictions': [B, T, num_chars], 'vi_conv_feature': [B, HW, Cf]}
    """
    del labels_length  # only used on the training path
    B = images_nchw.shape[0]
    cf = params["c_feat"]
    nc = params["num_chars"]
    cfp = params["w_rvi"].shape[0]

    if vi_conv_feature is None:
        x_nhwc = jnp.transpose(images_nchw, (0, 2, 3, 1))
        vi_pad = backbone_rvi(x_nhwc, params["w_conv"], params["b_conv"],
                              params["w_rvi"], params["b_rvi"])  # [B,HW,Cfp] bf16
        vi_conv_feature = vi_pad[..., :cf].astype(jnp.float32)
    else:
        bb_, hw_, _ = vi_conv_feature.shape
        vi_pad = jnp.zeros((bb_, hw_, cfp), jnp.bfloat16)
        vi_pad = vi_pad.at[..., :cf].set(vi_conv_feature.astype(jnp.bfloat16))

    emb = jnp.take(params["embed"], labels_ids, axis=0)             # [B, T, D]
    logits_pad = recognition_head(emb, vi_pad, params["wq"], params["wkv"],
                                  params["wo"], params["bo"])
    predictions = logits_pad[..., :nc]

    return {"predictions": predictions,
            "vi_conv_feature": vi_conv_feature}


if __name__ == "__main__":
    key = jax.random.PRNGKey(0)
    k_img, k_lab, k_par = jax.random.split(key, 3)

    B, Cin, H, W = 2, 3, 16, 16
    T, num_chars = 8, 40

    images = jax.random.normal(k_img, (B, Cin, H, W), jnp.float32)
    labels_ids = jax.random.randint(k_lab, (B, T), 0, num_chars, jnp.int32)
    labels_length = jnp.array([5, 8], jnp.int32)

    params = init_params(k_par, c_in=Cin, c_feat=32, embed_dim=32,
                         num_chars=num_chars)

    out = vinet_forward(params, images, labels_length, labels_ids)
    jax.block_until_ready(out)

    assert out["predictions"].shape == (B, T, num_chars)
    assert out["vi_conv_feature"].shape == (B, H * W, 32)
    print("KERNEL_OK")
</pallas_src>

<mosaic_0001>
module attributes {stable_mosaic.version = 11 : i64} {
  func.func @_backbone_rvi_kernel(%arg0: i32, %arg1: memref<1x18x18x3xf32, #tpu.memory_space<vmem>>, %arg2: memref<9x3x128xf32, #tpu.memory_space<vmem>>, %arg3: memref<1x128xf32, #tpu.memory_space<vmem>>, %arg4: memref<128x128xbf16, #tpu.memory_space<vmem>>, %arg5: memref<1x128xf32, #tpu.memory_space<vmem>>, %arg6: memref<1x256x128xbf16, #tpu.memory_space<vmem>>) attributes {dimension_semantics = [#tpu.dimension_semantics<parallel>], iteration_bounds = array<i64: 2>, scalar_prefetch = 0 : i64, scratch_operands = 0 : i64, tpu.core_type = #tpu.core_type<tc>, window_params = [{transform_indices = @transform_0, window_bounds = array<i64: 1, 18, 18, 3>}, {pipeline_mode = #tpu.pipeline_mode<synchronous>, transform_indices = @transform_1, window_bounds = array<i64: 9, 3, 128>}, {pipeline_mode = #tpu.pipeline_mode<synchronous>, transform_indices = @transform_2, window_bounds = array<i64: 1, 128>}, {pipeline_mode = #tpu.pipeline_mode<synchronous>, transform_indices = @transform_3, window_bounds = array<i64: 128, 128>}, {pipeline_mode = #tpu.pipeline_mode<synchronous>, transform_indices = @transform_4, window_bounds = array<i64: 1, 128>}, {transform_indices = @transform_5, window_bounds = array<i64: 1, 256, 128>}]} {
    %cst = arith.constant 0.000000e+00 : f32
    %0 = vector.broadcast %cst : f32 to vector<256x128xf32>
    %c0 = arith.constant 0 : index
    %c0_0 = arith.constant 0 : index
    %c0_1 = arith.constant 0 : index
    %c0_2 = arith.constant 0 : index
    %1 = vector.load %arg1[%c0, %c0_0, %c0_1, %c0_2] : memref<1x18x18x3xf32, #tpu.memory_space<vmem>>, vector<1x16x16x3xf32>
    %2 = vector.shape_cast %1 : vector<1x16x16x3xf32> to vector<16x16x3xf32>
    %3 = vector.shape_cast %2 : vector<16x16x3xf32> to vector<256x3xf32>
    %c0_3 = arith.constant 0 : index
    %c0_4 = arith.constant 0 : index
    %c0_5 = arith.constant 0 : index
    %4 = vector.load %arg2[%c0_3, %c0_4, %c0_5] : memref<9x3x128xf32, #tpu.memory_space<vmem>>, vector<1x3x128xf32>
    %5 = vector.shape_cast %4 : vector<1x3x128xf32> to vector<3x128xf32>
    %cst_6 = arith.constant dense<0.000000e+00> : vector<256x128xf32>
    %6 = tpu.matmul %3, %5, %cst_6 {dimension_numbers = #tpu.dot_dimension_numbers<[1], [0], [0], [1], [0, 0, 1, 1], [], []>} : vector<256x3xf32>, vector<3x128xf32>, vector<256x128xf32> -> vector<256x128xf32>
    %7 = arith.addf %0, %6 : vector<256x128xf32>
    %c0_7 = arith.constant 0 : index
    %c0_8 = arith.constant 0 : index
    %c1 = arith.constant 1 : index
    %c0_9 = arith.constant 0 : index
    %8 = vector.load %arg1[%c0_7, %c0_8, %c1, %c0_9] : memref<1x18x18x3xf32, #tpu.memory_space<vmem>>, vector<1x16x16x3xf32>
    %9 = vector.shape_cast %8 : vector<1x16x16x3xf32> to vector<16x16x3xf32>
    %10 = vector.shape_cast %9 : vector<16x16x3xf32> to vector<256x3xf32>
    %c1_10 = arith.constant 1 : index
    %c0_11 = arith.constant 0 : index
    %c0_12 = arith.constant 0 : index
    %11 = vector.load %arg2[%c1_10, %c0_11, %c0_12] : memref<9x3x128xf32, #tpu.memory_space<vmem>>, vector<1x3x128xf32>
    %12 = vector.shape_cast %11 : vector<1x3x128xf32> to vector<3x128xf32>
    %cst_13 = arith.constant dense<0.000000e+00> : vector<256x128xf32>
    %13 = tpu.matmul %10, %12, %cst_13 {dimension_numbers = #tpu.dot_dimension_numbers<[1], [0], [0], [1], [0, 0, 1, 1], [], []>} : vector<256x3xf32>, vector<3x128xf32>, vector<256x128xf32> -> vector<256x128xf32>
    %14 = arith.addf %7, %13 : vector<256x128xf32>
    %c0_14 = arith.constant 0 : index
    %c0_15 = arith.constant 0 : index
    %c2 = arith.constant 2 : index
    %c0_16 = arith.constant 0 : index
    %15 = vector.load %arg1[%c0_14, %c0_15, %c2, %c0_16] : memref<1x18x18x3xf32, #tpu.memory_space<vmem>>, vector<1x16x16x3xf32>
    %16 = vector.shape_cast %15 : vector<1x16x16x3xf32> to vector<16x16x3xf32>
    %17 = vector.shape_cast %16 : vector<16x16x3xf32> to vector<256x3xf32>
    %c2_17 = arith.constant 2 : index
    %c0_18 = arith.constant 0 : index
    %c0_19 = arith.constant 0 : index
    %18 = vector.load %arg2[%c2_17, %c0_18, %c0_19] : memref<9x3x128xf32, #tpu.memory_space<vmem>>, vector<1x3x128xf32>
    %19 = vector.shape_cast %18 : vector<1x3x128xf32> to vector<3x128xf32>
    %cst_20 = arith.constant dense<0.000000e+00> : vector<256x128xf32>
    %20 = tpu.matmul %17, %19, %cst_20 {dimension_numbers = #tpu.dot_dimension_numbers<[1], [0], [0], [1], [0, 0, 1, 1], [], []>} : vector<256x3xf32>, vector<3x128xf32>, vector<256x128xf32> -> vector<256x128xf32>
    %21 = arith.addf %14, %20 : vector<256x128xf32>
    %c0_21 = arith.constant 0 : index
    %c1_22 = arith.constant 1 : index
    %c0_23 = arith.constant 0 : index
    %c0_24 = arith.constant 0 : index
    %22 = vector.load %arg1[%c0_21, %c1_22, %c0_23, %c0_24] : memref<1x18x18x3xf32, #tpu.memory_space<vmem>>, vector<1x16x16x3xf32>
    %23 = vector.shape_cast %22 : vector<1x16x16x3xf32> to vector<16x16x3xf32>
    %24 = vector.shape_cast %23 : vector<16x16x3xf32> to vector<256x3xf32>
    %c3 = arith.constant 3 : index
    %c0_25 = arith.constant 0 : index
    %c0_26 = arith.constant 0 : index
    %25 = vector.load %arg2[%c3, %c0_25, %c0_26] : memref<9x3x128xf32, #tpu.memory_space<vmem>>, vector<1x3x128xf32>
    %26 = vector.shape_cast %25 : vector<1x3x128xf32> to vector<3x128xf32>
    %cst_27 = arith.constant dense<0.000000e+00> : vector<256x128xf32>
    %27 = tpu.matmul %24, %26, %cst_27 {dimension_numbers = #tpu.dot_dimension_numbers<[1], [0], [0], [1], [0, 0, 1, 1], [], []>} : vector<256x3xf32>, vector<3x128xf32>, vector<256x128xf32> -> vector<256x128xf32>
    %28 = arith.addf %21, %27 : vector<256x128xf32>
    %c0_28 = arith.constant 0 : index
    %c1_29 = arith.constant 1 : index
    %c1_30 = arith.constant 1 : index
    %c0_31 = arith.constant 0 : index
    %29 = vector.load %arg1[%c0_28, %c1_29, %c1_30, %c0_31] : memref<1x18x18x3xf32, #tpu.memory_space<vmem>>, vector<1x16x16x3xf32>
    %30 = vector.shape_cast %29 : vector<1x16x16x3xf32> to vector<16x16x3xf32>
    %31 = vector.shape_cast %30 : vector<16x16x3xf32> to vector<256x3xf32>
    %c4 = arith.constant 4 : index
    %c0_32 = arith.constant 0 : index
    %c0_33 = arith.constant 0 : index
    %32 = vector.load %arg2[%c4, %c0_32, %c0_33] : memref<9x3x128xf32, #tpu.memory_space<vmem>>, vector<1x3x128xf32>
    %33 = vector.shape_cast %32 : vector<1x3x128xf32> to vector<3x128xf32>
    %cst_34 = arith.constant dense<0.000000e+00> : vector<256x128xf32>
    %34 = tpu.matmul %31, %33, %cst_34 {dimension_numbers = #tpu.dot_dimension_numbers<[1], [0], [0], [1], [0, 0, 1, 1], [], []>} : vector<256x3xf32>, vector<3x128xf32>, vector<256x128xf32> -> vector<256x128xf32>
    %35 = arith.addf %28, %34 : vector<256x128xf32>
    %c0_35 = arith.constant 0 : index
    %c1_36 = arith.constant 1 : index
    %c2_37 = arith.constant 2 : index
    %c0_38 = arith.constant 0 : index
    %36 = vector.load %arg1[%c0_35, %c1_36, %c2_37, %c0_38] : memref<1x18x18x3xf32, #tpu.memory_space<vmem>>, vector<1x16x16x3xf32>
    %37 = vector.shape_cast %36 : vector<1x16x16x3xf32> to vector<16x16x3xf32>
    %38 = vector.shape_cast %37 : vector<16x16x3xf32> to vector<256x3xf32>
    %c5 = arith.constant 5 : index
    %c0_39 = arith.constant 0 : index
    %c0_40 = arith.constant 0 : index
    %39 = vector.load %arg2[%c5, %c0_39, %c0_40] : memref<9x3x128xf32, #tpu.memory_space<vmem>>, vector<1x3x128xf32>
    %40 = vector.shape_cast %39 : vector<1x3x128xf32> to vector<3x128xf32>
    %cst_41 = arith.constant dense<0.000000e+00> : vector<256x128xf32>
    %41 = tpu.matmul %38, %40, %cst_41 {dimension_numbers = #tpu.dot_dimension_numbers<[1], [0], [0], [1], [0, 0, 1, 1], [], []>} : vector<256x3xf32>, vector<3x128xf32>, vector<256x128xf32> -> vector<256x128xf32>
    %42 = arith.addf %35, %41 : vector<256x128xf32>
    %c0_42 = arith.constant 0 : index
    %c2_43 = arith.constant 2 : index
    %c0_44 = arith.constant 0 : index
    %c0_45 = arith.constant 0 : index
    %43 = vector.load %arg1[%c0_42, %c2_43, %c0_44, %c0_45] : memref<1x18x18x3xf32, #tpu.memory_space<vmem>>, vector<1x16x16x3xf32>
    %44 = vector.shape_cast %43 : vector<1x16x16x3xf32> to vector<16x16x3xf32>
    %45 = vector.shape_cast %44 : vector<16x16x3xf32> to vector<256x3xf32>
    %c6 = arith.constant 6 : index
    %c0_46 = arith.constant 0 : index
    %c0_47 = arith.constant 0 : index
    %46 = vector.load %arg2[%c6, %c0_46, %c0_47] : memref<9x3x128xf32, #tpu.memory_space<vmem>>, vector<1x3x128xf32>
    %47 = vector.shape_cast %46 : vector<1x3x128xf32> to vector<3x128xf32>
    %cst_48 = arith.constant dense<0.000000e+00> : vector<256x128xf32>
    %48 = tpu.matmul %45, %47, %cst_48 {dimension_numbers = #tpu.dot_dimension_numbers<[1], [0], [0], [1], [0, 0, 1, 1], [], []>} : vector<256x3xf32>, vector<3x128xf32>, vector<256x128xf32> -> vector<256x128xf32>
    %49 = arith.addf %42, %48 : vector<256x128xf32>
    %c0_49 = arith.constant 0 : index
    %c2_50 = arith.constant 2 : index
    %c1_51 = arith.constant 1 : index
    %c0_52 = arith.constant 0 : index
    %50 = vector.load %arg1[%c0_49, %c2_50, %c1_51, %c0_52] : memref<1x18x18x3xf32, #tpu.memory_space<vmem>>, vector<1x16x16x3xf32>
    %51 = vector.shape_cast %50 : vector<1x16x16x3xf32> to vector<16x16x3xf32>
    %52 = vector.shape_cast %51 : vector<16x16x3xf32> to vector<256x3xf32>
    %c7 = arith.constant 7 : index
    %c0_53 = arith.constant 0 : index
    %c0_54 = arith.constant 0 : index
    %53 = vector.load %arg2[%c7, %c0_53, %c0_54] : memref<9x3x128xf32, #tpu.memory_space<vmem>>, vector<1x3x128xf32>
    %54 = vector.shape_cast %53 : vector<1x3x128xf32> to vector<3x128xf32>
    %cst_55 = arith.constant dense<0.000000e+00> : vector<256x128xf32>
    %55 = tpu.matmul %52, %54, %cst_55 {dimension_numbers = #tpu.dot_dimension_numbers<[1], [0], [0], [1], [0, 0, 1, 1], [], []>} : vector<256x3xf32>, vector<3x128xf32>, vector<256x128xf32> -> vector<256x128xf32>
    %56 = arith.addf %49, %55 : vector<256x128xf32>
    %c0_56 = arith.constant 0 : index
    %c2_57 = arith.constant 2 : index
    %c2_58 = arith.constant 2 : index
    %c0_59 = arith.constant 0 : index
    %57 = vector.load %arg1[%c0_56, %c2_57, %c2_58, %c0_59] : memref<1x18x18x3xf32, #tpu.memory_space<vmem>>, vector<1x16x16x3xf32>
    %58 = vector.shape_cast %57 : vector<1x16x16x3xf32> to vector<16x16x3xf32>
    %59 = vector.shape_cast %58 : vector<16x16x3xf32> to vector<256x3xf32>
    %c8 = arith.constant 8 : index
    %c0_60 = arith.constant 0 : index
    %c0_61 = arith.constant 0 : index
    %60 = vector.load %arg2[%c8, %c0_60, %c0_61] : memref<9x3x128xf32, #tpu.memory_space<vmem>>, vector<1x3x128xf32>
    %61 = vector.shape_cast %60 : vector<1x3x128xf32> to vector<3x128xf32>
    %cst_62 = arith.constant dense<0.000000e+00> : vector<256x128xf32>
    %62 = tpu.matmul %59, %61, %cst_62 {dimension_numbers = #tpu.dot_dimension_numbers<[1], [0], [0], [1], [0, 0, 1, 1], [], []>} : vector<256x3xf32>, vector<3x128xf32>, vector<256x128xf32> -> vector<256x128xf32>
    %63 = arith.addf %56, %62 : vector<256x128xf32>
    %c0_63 = arith.constant 0 : index
    %c0_64 = arith.constant 0 : index
    %64 = vector.load %arg3[%c0_63, %c0_64] : memref<1x128xf32, #tpu.memory_space<vmem>>, vector<1x128xf32>
    %65 = vector.broadcast %64 : vector<1x128xf32> to vector<256x128xf32>
    %66 = arith.addf %63, %65 : vector<256x128xf32>
    %cst_65 = arith.constant 0.000000e+00 : f32
    %67 = vector.broadcast %cst_65 : f32 to vector<256x128xf32>
    %68 = arith.maximumf %66, %67 : vector<256x128xf32>
    %69 = arith.truncf %68 : vector<256x128xf32> to vector<256x128xbf16>
    %c0_66 = arith.constant 0 : index
    %c0_67 = arith.constant 0 : index
    %70 = vector.load %arg4[%c0_66, %c0_67] : memref<128x128xbf16, #tpu.memory_space<vmem>>, vector<128x128xbf16>
    %cst_68 = arith.constant dense<0.000000e+00> : vector<256x128xf32>
    %71 = tpu.matmul %69, %70, %cst_68 {dimension_numbers = #tpu.dot_dimension_numbers<[1], [0], [0], [1], [0, 0, 1, 1], [], []>} : vector<256x128xbf16>, vector<128x128xbf16>, vector<256x128xf32> -> vector<256x128xf32>
    %c0_69 = arith.constant 0 : index
    %c0_70 = arith.constant 0 : index
    %72 = vector.load %arg5[%c0_69, %c0_70] : memref<1x128xf32, #tpu.memory_space<vmem>>, vector<1x128xf32>
    %73 = vector.broadcast %72 : vector<1x128xf32> to vector<256x128xf32>
    %74 = arith.addf %71, %73 : vector<256x128xf32>
    %cst_71 = arith.constant 0.000000e+00 : f32
    %75 = vector.broadcast %cst_71 : f32 to vector<256x128xf32>
    %76 = arith.maximumf %74, %75 : vector<256x128xf32>
    %77 = arith.truncf %76 : vector<256x128xf32> to vector<256x128xbf16>
    %c0_72 = arith.constant 0 : index
    %c0_73 = arith.constant 0 : index
    %c0_74 = arith.constant 0 : index
    %78 = vector.load %arg6[%c0_72, %c0_73, %c0_74] : memref<1x256x128xbf16, #tpu.memory_space<vmem>>, vector<1x256x128xbf16>
    %79 = vector.shape_cast %78 : vector<1x256x128xbf16> to vector<256x128xbf16>
    %80 = vector.shape_cast %77 : vector<256x128xbf16> to vector<1x256x128xbf16>
    tpu.vector_store %arg6[%c0_72, %c0_73, %c0_74], %80 {strides = array<i32>} : memref<1x256x128xbf16, #tpu.memory_space<vmem>>, vector<1x256x128xbf16>,
    return
  }
  func.func @transform_0(%arg0: i32) -> (i32, i32, i32, i32) {
    %c0_i32 = arith.constant 0 : i32
    %c0_i32_0 = arith.constant 0 : i32
    %c0_i32_1 = arith.constant 0 : i32
    %c0_i32_2 = arith.constant 0 : i32
    return %arg0, %c0_i32, %c0_i32_0, %c0_i32_1 : i32, i32, i32, i32
  }
  func.func @transform_1(%arg0: i32) -> (i32, i32, i32) {
    %c0_i32 = arith.constant 0 : i32
    %c0_i32_0 = arith.constant 0 : i32
    %c0_i32_1 = arith.constant 0 : i32
    %c0_i32_2 = arith.constant 0 : i32
    return %c0_i32, %c0_i32_0, %c0_i32_1 : i32, i32, i32
  }
  func.func @transform_2(%arg0: i32) -> (i32, i32) {
    %c0_i32 = arith.constant 0 : i32
    %c0_i32_0 = arith.constant 0 : i32
    %c0_i32_1 = arith.constant 0 : i32
    return %c0_i32, %c0_i32_0 : i32, i32
  }
  func.func @transform_3(%arg0: i32) -> (i32, i32) {
    %c0_i32 = arith.constant 0 : i32
    %c0_i32_0 = arith.constant 0 : i32
    %c0_i32_1 = arith.constant 0 : i32
    return %c0_i32, %c0_i32_0 : i32, i32
  }
  func.func @transform_4(%arg0: i32) -> (i32, i32) {
    %c0_i32 = arith.constant 0 : i32
    %c0_i32_0 = arith.constant 0 : i32
    %c0_i32_1 = arith.constant 0 : i32
    return %c0_i32, %c0_i32_0 : i32, i32
  }
  func.func @transform_5(%arg0: i32) -> (i32, i32, i32) {
    %c0_i32 = arith.constant 0 : i32
    %c0_i32_0 = arith.constant 0 : i32
    %c0_i32_1 = arith.constant 0 : i32
    return %arg0, %c0_i32, %c0_i32_0 : i32, i32, i32
  }
}

</mosaic_0001>

<bundles_post_ra>
// kernel: tpu_custom_call.1
= control target key start
LH: loop header
LB: loop body
LE: loop exit
PB: predicated region body
PF: predicated region fallthrough
CT: control target
= control target key end

     0   :  { %10 = vsyncpa [#allocation3], 0  ;;  %s7376_s0 = inlined_call_operand.vmem [shape: f32[2,18,18,3], index: 0, kind: input, shape index: {}]   ;;  %s7377_s1 = inlined_call_operand.vmem [shape: f32[9,3,128], index: 1, kind: input, shape index: {}]   ;;  %s7378_s2 = inlined_call_operand.vmem [shape: f32[1,128], index: 2, kind: input, shape index: {}]   ;;  %s7379_s3 = inlined_call_operand.vmem [shape: bf16[128,128], index: 3, kind: input, shape index: {}]   ;;  %s7380_s4 = inlined_call_operand.vmem [shape: f32[1,128], index: 4, kind: input, shape index: {}]   ;;  %s7381_s5 = inlined_call_operand.hbm [shape: bf16[2,256,128], index: 5, kind: output, shape index: {}]  }
   0x1   :  { %12 = vsyncpa [#allocation3 + $0x1], 0  ;;  %s6160_s18 = smov 0   ;;  %s6162_s19 = smov 0  }
   0x2   :  { %s6164_s20 = smov 0   ;;  %s6166_s21 = smov 0  }
   0x3 LB: > { %s6181_s22 = sadd.s32 4294967295, %s6125_s21   ;;  %s4260_s23 = sadd.s32 4294967294, %s6125_s21   ;;  %s6125_s21 = sphi %s6166_s21, %s7492_s21   ;;  %s6121_s20 = sphi %s6164_s20, %s7491_s20   ;;  %s6117_s19 = sphi %s6162_s19, %s7490_s19   ;;  %s6113_s18 = sphi %s6160_s18, %s7489_s18  }
   0x4   : > { %s6185_s24 = sadd.s32 1, %s6125_s21   ;;  %s135_s25 = sadd.s32 1, %s6121_s20 }
   0x5   : > { %s132_s26 = ssub.s32 %s6125_s21, %s6185_s24  ;;  %p145_p0 = scmp.ne.s32.totalorder %s6121_s20, %s6117_s19 }
   0x6   : > { %p133_p1 = scmp.eq.s32.totalorder %s132_s26, 0  ;;  %p146_p2 = scmp.eq.s32.totalorder %s6181_s22, 1 }
   0x7   : > { %p151_p3 = scmp.ne.s32.totalorder %s6117_s19, %s6113_s18  ;;  %p152_p4 = scmp.eq.s32.totalorder %s4260_s23, 1 }
   0x8   : > { %s6196_s27 = scalar_select %p133_p1, %s6121_s20, %s135_s25  }
   0x9   : > { %p6198_p5 = por %p146_p2, %p145_p0  ;;  %p6202_p6 = por %p152_p4, %p151_p3 }
   0xa   : > { %p4263_p7 = scmp.ge.s32.totalorder %s6125_s21, 1  ;;  %p190_p8 = scmp.lt.s32.totalorder %s6125_s21, 3 }
   0xc   : > { %p191_p9 = pnand %p4263_p7, %p190_p8 }
   0xe   : > { %194 = sbr.rel (%p191_p9) target bundleno = 803 (0x323), region = 40 }
  0x15   : > { %vm388_vm0 = vcmask 1042432   ;;  %v4465_v0 = vld [vmem:[%s7377_s1 + $0x10] sm:$0x7]  ;;  %v4266_v1 = vld [vmem:[%s7377_s1 + $0x4] sm:$0x7]  ;;  %p218_p10 = scmp.lt.s32.totalorder %s6181_s22, 1 }
  0x16   : > { %5459 = vmatprep.subr.msk.mxu0 %vm388_vm0, %v4465_v0  ;;  %5259 = vmatprep.subr.msk.mxu1 %vm388_vm0, %v4266_v1  ;;  %v4531_v2 = vld [vmem:[%s7377_s1 + $0x14] sm:$0x7]  ;;  %v256_v3 = vld [vmem:[%s7377_s1] sm:$0x7]  ;;  %vm291_vm1 = vcmask 23552   ;;  %s215_s16 = sand.u32 1, %s6117_s19  }
  0x17   : > { %5460 = vmatpush3.msk.msra.mxu0 %vm388_vm0, %v4465_v0  ;;  %5260 = vmatpush3.msk.msra.mxu1 %vm388_vm0, %v4266_v1  ;;  %s219_s13 = scalar_select %p218_p10, %s6181_s22, 1  ;;  %v6247_v9 = vld [vmem:[%s7377_s1 + $0x18] sm:$0x7]  ;;  %v6252_v10 = vld [vmem:[%s7377_s1 + $0x8] sm:$0x7] }
  0x18   : > { %5509 = vmatprep.subr.msk.mxu0 %vm388_vm0, %v4531_v2  ;;  %5309 = vmatprep.subr.msk.mxu1 %vm388_vm0, %v256_v3  ;;  %v6488_v46 = vld [vmem:[%s7377_s1 + $0x1c] sm:$0x7]  ;;  %v6493_v47 = vld [vmem:[%s7377_s1 + $0xc] sm:$0x7]  ;;  %s4264_s23 = sshll.u32 %s215_s16, 7  ;;  %s4842_s26 = sshll.u32 %s6181_s22, 11 }
  0x19   : > { %s6013_s14 = smul.u32 432, %s219_s13  ;;  %s7278_s25 = scalar_lea.vmem [#allocation2], %s4264_s23 }
  0x1a   : > { %s4198_s30 = sshll.u32 %s7278_s25, 4  ;;  %s7327_s8 = scalar_lea.hbm %s7381_s5, %s4842_s26  ;;  %s7329_s30 = int_to_ptr.vmem [resolvable:$true] %s4198_s30 }
  0x1b   : > { %s6231_s17 = scalar_lea.vmem %s7376_s0, %s6013_s14  ;;  %s7335_s22 = scalar_lea.sflag [#allocation3], %s215_s16 }
  0x1c   : > { %v257_v4 = vld [vmem:[%s6231_s17 + $0x1] sm:$0xff]  ;;  %v4433_v5 = vld [vmem:[%s6231_s17 + $0x19] sm:$0xff]  ;;  %v258_v6 = vld [vmem:[%s6231_s17 + $0x9] sm:$0xff]  ;;  %s6063_s9 = scalar_lea.vmem %s7329_s30, 2048  ;;  %s6127_s10 = smov [#allocation2]  }
  0x1d   : > { %5261 = vmatprep.mubr.msk.f32.mxu1 %vm291_vm1, %v257_v4  ;;  %5461 = vmatprep.mubr.msk.f32.mxu0 %vm291_vm1, %v4433_v5  ;;  %v4434_v7 = vld [vmem:[%s6231_s17 + $0x21] sm:$0xff]  ;;  %v6240_v8 = vld [vmem:[%s6231_s17 + $0x31] sm:$0xff]  ;;  %v6257_v11 = vld [vmem:[%s6231_s17 + $0x39] sm:$0xff]  ;;  %p6064_p11 = scmp.ne.s32.totalorder %s7329_s30, %s6063_s9 }
  0x1e   : > { %7419 = vst [vmem:[#allocation5_spill] sm:$0xff] %v6240_v8  ;;  %5262 = vmatmul.mubr.msk.f32.vlgmr.msra.gmra.mrb[0].mxu1 %vm291_vm1, %v258_v6  ;;  %5462 = vmatmul.mubr.msk.f32.vlgmr.msra.gmra.mrb[0].mxu0 %vm291_vm1, %v4434_v7  ;;  %7420 = vst [vmem:[#allocation6_spill] sm:$0xff] %v6257_v11  ;;  %v6262_v12 = vld [vmem:[%s6231_s17 + $0x49] sm:$0xff]  ;;  %v6277_v13 = vld [vmem:[%s6231_s17 + $0x51] sm:$0xff] }
  0x1f   : > { %5510 = vmatpush3.msk.msra.mxu0 %vm388_vm0, %v4531_v2  ;;  %5264 = vmatprep.mubr.msk.f32.mxu1 %vm291_vm1, %v4433_v5  ;;  %7421 = vst [vmem:[#allocation7_spill] sm:$0xff] %v6262_v12  ;;  %7422 = vst [vmem:[#allocation8_spill] sm:$0xff] %v6277_v13  ;;  %v6280_v14 = vld [vmem:[%s6231_s17 + $0x61] sm:$0xff]  ;;  %v6291_v15 = vld [vmem:[%s6231_s17 + $0x69] sm:$0xff]  ;;  %p6065_p12 = pnand %p6064_p11, %p6198_p5 }
  0x20   : > { %5464 = vmatprep.mubr.msk.f32.mxu0 %vm291_vm1, %v6240_v8  ;;  %5310 = vmatpush3.msk.msra.mxu1 %vm388_vm0, %v256_v3  ;;  %7423 = vst [vmem:[#allocation9_spill] sm:$0xff] %v6280_v14  ;;  %7424 = vst [vmem:[#allocation10_spill] sm:$0xff] %v6291_v15  ;;  %v6294_v16 = vld [vmem:[%s6231_s17 + $0x79] sm:$0xff]  ;;  %v6305_v17 = vld [vmem:[%s6231_s17 + $0x81] sm:$0xff] }
  0x21   : > { %5559 = vmatprep.subr.msk.mxu0 %vm388_vm0, %v6247_v9  ;;  %5359 = vmatprep.subr.msk.mxu1 %vm388_vm0, %v6252_v10  ;;  %7425 = vst [vmem:[#allocation11_spill] sm:$0xff] %v6294_v16  ;;  %7426 = vst [vmem:[#allocation12_spill] sm:$0xff] %v6305_v17  ;;  %v6308_v18 = vld [vmem:[%s6231_s17 + $0x91] sm:$0xff]  ;;  %v6319_v19 = vld [vmem:[%s6231_s17 + $0x99] sm:$0xff]  ;;  %p6066_p13 = pneg %p6065_p12 }
  0x22   : > { %5265 = vmatmul.mubr.msk.f32.gmra.mrb[2].mxu1 %vm291_vm1, %v4434_v7  ;;  %5465 = vmatmul.mubr.msk.f32.gmra.mrb[2].mxu0 %vm291_vm1, %v6257_v11  ;;  %7427 = vst [vmem:[#allocation13_spill] sm:$0xff] %v6308_v18  ;;  %7428 = vst [vmem:[#allocation14_spill] sm:$0xff] %v6319_v19  ;;  %v6322_v20 = vld [vmem:[%s6231_s17 + $0xa9] sm:$0xff]  ;;  %v6333_v21 = vld [vmem:[%s6231_s17 + $0xb1] sm:$0xff] }
  0x23   : > { %5267 = vmatprep.mubr.msk.f32.mxu1 %vm291_vm1, %v6240_v8  ;;  %5467 = vmatprep.mubr.msk.f32.mxu0 %vm291_vm1, %v6262_v12  ;;  %7429 = vst [vmem:[#allocation15_spill] sm:$0xff] %v6322_v20  ;;  %7430 = vst [vmem:[#allocation16_spill] sm:$0xff] %v6333_v21  ;;  %v6336_v22 = vld [vmem:[%s6231_s17 + $0xc1] sm:$0xff]  ;;  %v6347_v23 = vld [vmem:[%s6231_s17 + $0xc9] sm:$0xff] }
  0x24   : > { %7431 = vst [vmem:[#allocation17_spill] sm:$0xff] %v6336_v22  ;;  %7432 = vst [vmem:[#allocation18_spill] sm:$0xff] %v6347_v23  ;;  %v6350_v24 = vld [vmem:[%s6231_s17 + $0xd9] sm:$0xff]  ;;  %v6361_v25 = vld [vmem:[%s6231_s17 + $0xe1] sm:$0xff] }
  0x25   : > { %7433 = vst [vmem:[#allocation19_spill] sm:$0xff] %v6350_v24  ;;  %7434 = vst [vmem:[#allocation20_spill] sm:$0xff] %v6361_v25  ;;  %v6364_v26 = vld [vmem:[%s6231_s17 + $0xf1] sm:$0xff]  ;;  %v6375_v27 = vld [vmem:[%s6231_s17 + $0xf9] sm:$0xff] }
  0x26   : > { %5268 = vmatmul.mubr.msk.f32.gmra.mrb[4].mxu1 %vm291_vm1, %v6257_v11  ;;  %5468 = vmatmul.mubr.msk.f32.gmra.mrb[4].mxu0 %vm291_vm1, %v6277_v13  ;;  %7435 = vst [vmem:[#allocation21_spill] sm:$0xff] %v6364_v26  ;;  %7436 = vst [vmem:[#allocation22_spill] sm:$0xff] %v6375_v27  ;;  %v6378_v28 = vld [vmem:[%s6231_s17 + $0x109] sm:$0xff]  ;;  %v6389_v29 = vld [vmem:[%s6231_s17 + $0x111] sm:$0xff] }
  0x27   : > { %5270 = vmatprep.mubr.msk.f32.mxu1 %vm291_vm1, %v6262_v12  ;;  %5470 = vmatprep.mubr.msk.f32.mxu0 %vm291_vm1, %v6280_v14  ;;  %7437 = vst [vmem:[#allocation23_spill] sm:$0xff] %v6378_v28  ;;  %7438 = vst [vmem:[#allocation24_spill] sm:$0xff] %v6389_v29  ;;  %v6392_v30 = vld [vmem:[%s6231_s17 + $0x121] sm:$0xff]  ;;  %v6403_v31 = vld [vmem:[%s6231_s17 + $0x129] sm:$0xff] }
  0x28   : > { %7439 = vst [vmem:[#allocation25_spill] sm:$0xff] %v6392_v30  ;;  %7440 = vst [vmem:[#allocation26_spill] sm:$0xff] %v6403_v31  ;;  %v6406_v32 = vld [vmem:[%s6231_s17 + $0x139] sm:$0xff]  ;;  %v6417_v33 = vld [vmem:[%s6231_s17 + $0x141] sm:$0xff] }
  0x29   : > { %7441 = vst [vmem:[#allocation27_spill] sm:$0xff] %v6406_v32  ;;  %7442 = vst [vmem:[#allocation28_spill] sm:$0xff] %v6417_v33  ;;  %v6420_v34 = vld [vmem:[%s6231_s17 + $0x151] sm:$0xff]  ;;  %v6431_v35 = vld [vmem:[%s6231_s17 + $0x159] sm:$0xff] }
  0x2a   : > { %5271 = vmatmul.mubr.msk.f32.gmra.mrb[6].mxu1 %vm291_vm1, %v6277_v13  ;;  %5471 = vmatmul.mubr.msk.f32.gmra.mrb[6].mxu0 %vm291_vm1, %v6291_v15  ;;  %7443 = vst [vmem:[#allocation29_spill] sm:$0xff] %v6420_v34  ;;  %7444 = vst [vmem:[#allocation30_spill] sm:$0xff] %v6431_v35  ;;  %v6434_v36 = vld [vmem:[%s6231_s17 + $0x169] sm:$0xff]  ;;  %v6445_v37 = vld [vmem:[%s6231_s17 + $0x171] sm:$0xff] }
  0x2b   : > { %5273 = vmatprep.mubr.msk.f32.mxu1 %vm291_vm1, %v6280_v14  ;;  %5473 = vmatprep.mubr.msk.f32.mxu0 %vm291_vm1, %v6294_v16  ;;  %7445 = vst [vmem:[#allocation31_spill] sm:$0xff] %v6434_v36  ;;  %7446 = vst [vmem:[#allocation32_spill] sm:$0xff] %v6445_v37  ;;  %v6448_v38 = vld [vmem:[%s6231_s17 + $0x181] sm:$0xff]  ;;  %v6459_v39 = vld [vmem:[%s6231_s17 + $0x189] sm:$0xff] }
  0x2c   : > { %7447 = vst [vmem:[#allocation33_spill] sm:$0xff] %v6448_v38  ;;  %7448 = vst [vmem:[#allocation34_spill] sm:$0xff] %v6459_v39  ;;  %v224_v40 = vld [vmem:[%s6231_s17] sm:$0xff]  ;;  %v225_v42 = vld [vmem:[%s6231_s17 + $0x8] sm:$0xff] }
  0x2d   : > { %v6463_v41 = vld [vmem:[%s6231_s17 + $0x1a] sm:$0xff]  ;;  %v6474_v43 = vld [vmem:[%s6231_s17 + $0x22] sm:$0xff]  ;;  %v6480_v45 = vld [vmem:[%s6231_s17 + $0x32] sm:$0xff] }
  0x2e   : > { %5274 = vmatmul.mubr.msk.f32.gmra.mrb[8].mxu1 %vm291_vm1, %v6291_v15  ;;  %5474 = vmatmul.mubr.msk.f32.gmra.mrb[8].mxu0 %vm291_vm1, %v6305_v17  ;;  %v6477_v44 = vld [vmem:[%s6231_s17 + $0x18] sm:$0xff]  ;;  %v6500_v48 = vld [vmem:[%s6231_s17 + $0x20] sm:$0xff]  ;;  %v6508_v50 = vld [vmem:[%s6231_s17 + $0x30] sm:$0xff] }
  0x2f   : > { %5276 = vmatprep.mubr.msk.f32.mxu1 %vm291_vm1, %v6294_v16  ;;  %5476 = vmatprep.mubr.msk.f32.mxu0 %vm291_vm1, %v6308_v18  ;;  %7449 = vst [vmem:[#allocation35_spill] sm:$0xff] %v6477_v44  ;;  %7450 = vst [vmem:[#allocation36_spill] sm:$0xff] %v6500_v48  ;;  %v6503_v49 = vld [vmem:[%s6231_s17 + $0x3a] sm:$0xff]  ;;  %v6511_v51 = vld [vmem:[%s6231_s17 + $0x4a] sm:$0xff] }
  0x30   : > { %v6528_v52 = vld [vmem:[%s6231_s17 + $0x38] sm:$0xff]  ;;  %v6534_v54 = vld [vmem:[%s6231_s17 + $0x48] sm:$0xff]  ;;  %v6548_v56 = vld [vmem:[%s6231_s17 + $0x50] sm:$0xff] }
  0x31   : > { %v6531_v53 = vld [vmem:[%s6231_s17 + $0x52] sm:$0xff]  ;;  %v6537_v55 = vld [vmem:[%s6231_s17 + $0x62] sm:$0xff]  ;;  %v6551_v57 = vld [vmem:[%s6231_s17 + $0x6a] sm:$0xff] }
  0x32   : > { %5277 = vmatmul.mubr.msk.f32.gmra.mrb[10].mxu1 %vm291_vm1, %v6305_v17  ;;  %5477 = vmatmul.mubr.msk.f32.gmra.mrb[10].mxu0 %vm291_vm1, %v6319_v19  ;;  %v6554_v58 = vld [vmem:[%s6231_s17 + $0x60] sm:$0xff]  ;;  %v6568_v60 = vld [vmem:[%s6231_s17 + $0x68] sm:$0xff]  ;;  %v6574_v62 = vld [vmem:[%s6231_s17 + $0x78] sm:$0xff] }
  0x33   : > { %5279 = vmatprep.mubr.msk.f32.mxu1 %vm291_vm1, %v6308_v18  ;;  %5479 = vmatprep.mubr.msk.f32.mxu0 %vm291_vm1, %v6322_v20  ;;  %v6557_v59 = vld [vmem:[%s6231_s17 + $0x7a] sm:$0xff]  ;;  %v6571_v61 = vld [vmem:[%s6231_s17 + $0x82] sm:$0xff]  ;;  %v6577_v63 = vld [vmem:[%s6231_s17 + $0x92] sm:$0xff] }
  0x34   : > { %v6588_v0 = vld [vmem:[%s6231_s17 + $0x80] sm:$0xff]  ;;  %v6594_v2 = vld [vmem:[%s6231_s17 + $0x90] sm:$0xff]  ;;  %v6608_v4 = vld [vmem:[%s6231_s17 + $0x98] sm:$0xff] }
  0x35   : > { %v6591_v1 = vld [vmem:[%s6231_s17 + $0x9a] sm:$0xff]  ;;  %v6597_v3 = vld [vmem:[%s6231_s17 + $0xaa] sm:$0xff]  ;;  %v6611_v5 = vld [vmem:[%s6231_s17 + $0xb2] sm:$0xff] }
  0x36   : > { %5280 = vmatmul.mubr.msk.f32.gmra.mrb[12].mxu1 %vm291_vm1, %v6319_v19  ;;  %5480 = vmatmul.mubr.msk.f32.gmra.mrb[12].mxu0 %vm291_vm1, %v6333_v21  ;;  %v6614_v6 = vld [vmem:[%s6231_s17 + $0xa8] sm:$0xff]  ;;  %v6748_v19 = vld [vmem:[%s6231_s17 + $0x140] sm:$0xff]  ;;  %v6754_v17 = vld [vmem:[%s6231_s17 + $0x150] sm:$0xff] }
  0x37   : > { %5282 = vmatprep.mubr.msk.f32.mxu1 %vm291_vm1, %v6322_v20  ;;  %5482 = vmatprep.mubr.msk.f32.mxu0 %vm291_vm1, %v6336_v22  ;;  %v6617_v7 = vld [vmem:[%s6231_s17 + $0xc2] sm:$0xff]  ;;  %v6737_v20 = vld [vmem:[%s6231_s17 + $0x152] sm:$0xff]  ;;  %v6751_v18 = vld [vmem:[%s6231_s17 + $0x15a] sm:$0xff] }
  0x38   : > { %7451 = vst [vmem:[#allocation37_spill] sm:$0xff] %v6751_v18  ;;  %v6757_v16 = vld [vmem:[%s6231_s17 + $0x16a] sm:$0xff]  ;;  %v6768_v15 = vld [vmem:[%s6231_s17 + $0x158] sm:$0xff]  ;;  %v6777_v12 = vld [vmem:[%s6231_s17 + $0x182] sm:$0xff] }
  0x39   : > { %v6771_v14 = vld [vmem:[%s6231_s17 + $0x172] sm:$0xff]  ;;  %v6774_v13 = vld [vmem:[%s6231_s17 + $0x168] sm:$0xff]  ;;  %7452 = vst [vmem:[#allocation38_spill] sm:$0xff] %v6777_v12 }
  0x3a   : > { %5283 = vmatmul.mubr.msk.f32.gmra.mrb[14].mxu1 %vm291_vm1, %v6333_v21  ;;  %5483 = vmatmul.mubr.msk.f32.gmra.mrb[14].mxu0 %vm291_vm1, %v6347_v23  ;;  %v6734_v21 = vld [vmem:[%s6231_s17 + $0x138] sm:$0xff]  ;;  %v6788_v11 = vld [vmem:[%s6231_s17 + $0x170] sm:$0xff]  ;;  %v941_v8 = vld [vmem:[%s6231_s17 + $0x2] sm:$0xff] }
  0x3b   : > { %5285 = vmatprep.mubr.msk.f32.mxu1 %vm291_vm1, %v6336_v22  ;;  %5485 = vmatprep.mubr.msk.f32.mxu0 %vm291_vm1, %v6350_v24  ;;  %v6731_v22 = vld [vmem:[%s6231_s17 + $0x142] sm:$0xff] }
  0x3e   : > { %5286 = vmatmul.mubr.msk.f32.gmra.mrb[16].mxu1 %vm291_vm1, %v6347_v23  ;;  %5486 = vmatmul.mubr.msk.f32.gmra.mrb[16].mxu0 %vm291_vm1, %v6361_v25  ;;  %v6728_v23 = vld [vmem:[%s6231_s17 + $0x128] sm:$0xff] }
  0x3f   : > { %5288 = vmatprep.mubr.msk.f32.mxu1 %vm291_vm1, %v6350_v24  ;;  %5488 = vmatprep.mubr.msk.f32.mxu0 %vm291_vm1, %v6364_v26  ;;  %v6717_v24 = vld [vmem:[%s6231_s17 + $0x13a] sm:$0xff] }
  0x42   : > { %5289 = vmatmul.mubr.msk.f32.gmra.mrb[18].mxu1 %vm291_vm1, %v6361_v25  ;;  %5489 = vmatmul.mubr.msk.f32.gmra.mrb[18].mxu0 %vm291_vm1, %v6375_v27  ;;  %v6714_v25 = vld [vmem:[%s6231_s17 + $0x120] sm:$0xff] }
  0x43   : > { %5291 = vmatprep.mubr.msk.f32.mxu1 %vm291_vm1, %v6364_v26  ;;  %5491 = vmatprep.mubr.msk.f32.mxu0 %vm291_vm1, %v6378_v28  ;;  %v6711_v26 = vld [vmem:[%s6231_s17 + $0x12a] sm:$0xff] }
  0x46   : > { %5292 = vmatmul.mubr.msk.f32.gmra.mrb[20].mxu1 %vm291_vm1, %v6375_v27  ;;  %5492 = vmatmul.mubr.msk.f32.gmra.mrb[20].mxu0 %vm291_vm1, %v6389_v29  ;;  %v6708_v27 = vld [vmem:[%s6231_s17 + $0x110] sm:$0xff] }
  0x47   : > { %5294 = vmatprep.mubr.msk.f32.mxu1 %vm291_vm1, %v6378_v28  ;;  %5494 = vmatprep.mubr.msk.f32.mxu0 %vm291_vm1, %v6392_v30  ;;  %v6697_v28 = vld [vmem:[%s6231_s17 + $0x122] sm:$0xff] }
  0x4a   : > { %5295 = vmatmul.mubr.msk.f32.gmra.mrb[22].mxu1 %vm291_vm1, %v6389_v29  ;;  %5495 = vmatmul.mubr.msk.f32.gmra.mrb[22].mxu0 %vm291_vm1, %v6403_v31  ;;  %v6694_v29 = vld [vmem:[%s6231_s17 + $0x108] sm:$0xff] }
  0x4b   : > { %5297 = vmatprep.mubr.msk.f32.mxu1 %vm291_vm1, %v6392_v30  ;;  %5497 = vmatprep.mubr.msk.f32.mxu0 %vm291_vm1, %v6406_v32  ;;  %v6691_v30 = vld [vmem:[%s6231_s17 + $0x112] sm:$0xff] }
  0x4e   : > { %5298 = vmatmul.mubr.msk.f32.gmra.mrb[24].mxu1 %vm291_vm1, %v6403_v31  ;;  %5498 = vmatmul.mubr.msk.f32.gmra.mrb[24].mxu0 %vm291_vm1, %v6417_v33  ;;  %v6688_v31 = vld [vmem:[%s6231_s17 + $0xf8] sm:$0xff] }
  0x4f   : > { %5300 = vmatprep.mubr.msk.f32.mxu1 %vm291_vm1, %v6406_v32  ;;  %5500 = vmatprep.mubr.msk.f32.mxu0 %vm291_vm1, %v6420_v34  ;;  %v6677_v32 = vld [vmem:[%s6231_s17 + $0x10a] sm:$0xff] }
  0x52   : > { %5301 = vmatmul.mubr.msk.f32.gmra.mrb[26].mxu1 %vm291_vm1, %v6417_v33  ;;  %5501 = vmatmul.mubr.msk.f32.gmra.mrb[26].mxu0 %vm291_vm1, %v6431_v35  ;;  %v6674_v33 = vld [vmem:[%s6231_s17 + $0xf0] sm:$0xff] }
  0x53   : > { %5303 = vmatprep.mubr.msk.f32.mxu1 %vm291_vm1, %v6420_v34  ;;  %5503 = vmatprep.mubr.msk.f32.mxu0 %vm291_vm1, %v6434_v36  ;;  %v6671_v34 = vld [vmem:[%s6231_s17 + $0xfa] sm:$0xff] }
  0x56   : > { %5304 = vmatmul.mubr.msk.f32.gmra.mrb[28].mxu1 %vm291_vm1, %v6431_v35  ;;  %5504 = vmatmul.mubr.msk.f32.gmra.mrb[28].mxu0 %vm291_vm1, %v6445_v37  ;;  %v6668_v35 = vld [vmem:[%s6231_s17 + $0xe0] sm:$0xff] }
  0x57   : > { %5306 = vmatprep.mubr.msk.f32.mxu1 %vm291_vm1, %v6434_v36  ;;  %5506 = vmatprep.mubr.msk.f32.mxu0 %vm291_vm1, %v6448_v38  ;;  %v6651_v38 = vld [vmem:[%s6231_s17 + $0xe2] sm:$0xff]  ;;  %v6657_v36 = vld [vmem:[%s6231_s17 + $0xf2] sm:$0xff] }
  0x5a   : > { %5307 = vmatmul.mubr.msk.f32.gmra.mrb[30].mxu1 %vm291_vm1, %v6445_v37  ;;  %5507 = vmatmul.mubr.msk.f32.gmra.mrb[30].mxu0 %vm291_vm1, %v6459_v39  ;;  %v6648_v39 = vld [vmem:[%s6231_s17 + $0xc8] sm:$0xff]  ;;  %v6654_v37 = vld [vmem:[%s6231_s17 + $0xd8] sm:$0xff] }
  0x5b   : > { %5311 = vmatprep.mubr.msk.f32.mxu1 %vm291_vm1, %v224_v40  ;;  %5511 = vmatprep.mubr.msk.f32.mxu0 %vm291_vm1, %v6463_v41  ;;  %v6634_v40 = vld [vmem:[%s6231_s17 + $0xc0] sm:$0xff] }
  0x5e   : > { %5312 = vmatmul.mubr.msk.f32.vlgmr.msra.gmra.mrb[0].mxu1 %vm291_vm1, %v225_v42  ;;  %5512 = vmatmul.mubr.msk.f32.vlgmr.msra.gmra.mrb[0].mxu0 %vm291_vm1, %v6474_v43  ;;  %v6637_v42 = vld [vmem:[%s6231_s17 + $0xda] sm:$0xff] }
  0x5f   : > { %5560 = vmatpush3.msk.msra.mxu0 %vm388_vm0, %v6247_v9  ;;  %5314 = vmatprep.mubr.msk.f32.mxu1 %vm291_vm1, %v6477_v44  ;;  %v6628_v9 = vld [vmem:[%s6231_s17 + $0xb0] sm:$0xff] }
  0x60   : > { %5514 = vmatprep.mubr.msk.f32.mxu0 %vm291_vm1, %v6480_v45  ;;  %5360 = vmatpush3.msk.msra.mxu1 %vm388_vm0, %v6252_v10  ;;  %v6631_v10 = vld [vmem:[%s6231_s17 + $0xca] sm:$0xff] }
  0x61   : > { %5609 = vmatprep.subr.msk.mxu0 %vm388_vm0, %v6488_v46  ;;  %5409 = vmatprep.subr.msk.mxu1 %vm388_vm0, %v6493_v47  ;;  %v942_v44 = vld [vmem:[%s6231_s17 + $0xa] sm:$0xff] }
  0x62   : > { %5315 = vmatmul.mubr.msk.f32.gmra.mrb[2].mxu1 %vm291_vm1, %v6500_v48  ;;  %5515 = vmatmul.mubr.msk.f32.gmra.mrb[2].mxu0 %vm291_vm1, %v6503_v49  ;;  %v6791_v48 = vld [vmem:[%s6231_s17 + $0x18a] sm:$0xff] }
  0x63   : > { %5317 = vmatprep.mubr.msk.f32.mxu1 %vm291_vm1, %v6508_v50  ;;  %5517 = vmatprep.mubr.msk.f32.mxu0 %vm291_vm1, %v6511_v51  ;;  %7453 = vst [vmem:[#allocation39_spill] sm:$0xff] %v6791_v48 }
  0x66   : > { %5318 = vmatmul.mubr.msk.f32.gmra.mrb[4].mxu1 %vm291_vm1, %v6528_v52  ;;  %5518 = vmatmul.mubr.msk.f32.gmra.mrb[4].mxu0 %vm291_vm1, %v6531_v53 }
  0x67   : > { %5320 = vmatprep.mubr.msk.f32.mxu1 %vm291_vm1, %v6534_v54  ;;  %5520 = vmatprep.mubr.msk.f32.mxu0 %vm291_vm1, %v6537_v55 }
  0x6a   : > { %5321 = vmatmul.mubr.msk.f32.gmra.mrb[6].mxu1 %vm291_vm1, %v6548_v56  ;;  %5521 = vmatmul.mubr.msk.f32.gmra.mrb[6].mxu0 %vm291_vm1, %v6551_v57 }
  0x6b   : > { %5323 = vmatprep.mubr.msk.f32.mxu1 %vm291_vm1, %v6554_v58  ;;  %5523 = vmatprep.mubr.msk.f32.mxu0 %vm291_vm1, %v6557_v59 }
  0x6e   : > { %5324 = vmatmul.mubr.msk.f32.gmra.mrb[8].mxu1 %vm291_vm1, %v6568_v60  ;;  %5524 = vmatmul.mubr.msk.f32.gmra.mrb[8].mxu0 %vm291_vm1, %v6571_v61 }
  0x6f   : > { %5326 = vmatprep.mubr.msk.f32.mxu1 %vm291_vm1, %v6574_v62  ;;  %5526 = vmatprep.mubr.msk.f32.mxu0 %vm291_vm1, %v6577_v63 }
  0x72   : > { %5327 = vmatmul.mubr.msk.f32.gmra.mrb[10].mxu1 %vm291_vm1, %v6588_v0  ;;  %5527 = vmatmul.mubr.msk.f32.gmra.mrb[10].mxu0 %vm291_vm1, %v6591_v1 }
  0x73   : > { %5329 = vmatprep.mubr.msk.f32.mxu1 %vm291_vm1, %v6594_v2  ;;  %5529 = vmatprep.mubr.msk.f32.mxu0 %vm291_vm1, %v6597_v3 }
  0x76   : > { %5330 = vmatmul.mubr.msk.f32.gmra.mrb[12].mxu1 %vm291_vm1, %v6608_v4  ;;  %5530 = vmatmul.mubr.msk.f32.gmra.mrb[12].mxu0 %vm291_vm1, %v6611_v5 }
  0x77   : > { %5332 = vmatprep.mubr.msk.f32.mxu1 %vm291_vm1, %v6614_v6  ;;  %5532 = vmatprep.mubr.msk.f32.mxu0 %vm291_vm1, %v6617_v7 }
  0x7a   : > { %5333 = vmatmul.mubr.msk.f32.gmra.mrb[14].mxu1 %vm291_vm1, %v6628_v9  ;;  %5533 = vmatmul.mubr.msk.f32.gmra.mrb[14].mxu0 %vm291_vm1, %v6631_v10 }
  0x7b   : > { %5335 = vmatprep.mubr.msk.f32.mxu1 %vm291_vm1, %v6634_v40  ;;  %5535 = vmatprep.mubr.msk.f32.mxu0 %vm291_vm1, %v6637_v42 }
  0x7e   : > { %5336 = vmatmul.mubr.msk.f32.gmra.mrb[16].mxu1 %vm291_vm1, %v6648_v39  ;;  %5536 = vmatmul.mubr.msk.f32.gmra.mrb[16].mxu0 %vm291_vm1, %v6651_v38 }
  0x7f   : > { %5338 = vmatprep.mubr.msk.f32.mxu1 %vm291_vm1, %v6654_v37  ;;  %5538 = vmatprep.mubr.msk.f32.mxu0 %vm291_vm1, %v6657_v36 }
  0x82   : > { %5339 = vmatmul.mubr.msk.f32.gmra.mrb[18].mxu1 %vm291_vm1, %v6668_v35  ;;  %5539 = vmatmul.mubr.msk.f32.gmra.mrb[18].mxu0 %vm291_vm1, %v6671_v34 }
  0x83   : > { %5341 = vmatprep.mubr.msk.f32.mxu1 %vm291_vm1, %v6674_v33  ;;  %5541 = vmatprep.mubr.msk.f32.mxu0 %vm291_vm1, %v6677_v32 }
  0x86   : > { %5342 = vmatmul.mubr.msk.f32.gmra.mrb[20].mxu1 %vm291_vm1, %v6688_v31  ;;  %5542 = vmatmul.mubr.msk.f32.gmra.mrb[20].mxu0 %vm291_vm1, %v6691_v30 }
  0x87   : > { %5344 = vmatprep.mubr.msk.f32.mxu1 %vm291_vm1, %v6694_v29  ;;  %5544 = vmatprep.mubr.msk.f32.mxu0 %vm291_vm1, %v6697_v28 }
  0x8a   : > { %5345 = vmatmul.mubr.msk.f32.gmra.mrb[22].mxu1 %vm291_vm1, %v6708_v27  ;;  %5545 = vmatmul.mubr.msk.f32.gmra.mrb[22].mxu0 %vm291_vm1, %v6711_v26 }
  0x8b   : > { %5347 = vmatprep.mubr.msk.f32.mxu1 %vm291_vm1, %v6714_v25  ;;  %5547 = vmatprep.mubr.msk.f32.mxu0 %vm291_vm1, %v6717_v24 }
  0x8e   : > { %5348 = vmatmul.mubr.msk.f32.gmra.mrb[24].mxu1 %vm291_vm1, %v6728_v23  ;;  %5548 = vmatmul.mubr.msk.f32.gmra.mrb[24].mxu0 %vm291_vm1, %v6731_v22 }
  0x8f   : > { %5350 = vmatprep.mubr.msk.f32.mxu1 %vm291_vm1, %v6734_v21  ;;  %5550 = vmatprep.mubr.msk.f32.mxu0 %vm291_vm1, %v6737_v20 }
  0x92   : > { %5351 = vmatmul.mubr.msk.f32.gmra.mrb[26].mxu1 %vm291_vm1, %v6748_v19  ;;  %5551 = vmatmul.mubr.msk.f32.gmra.mrb[26].mxu0 %vm291_vm1, %v6751_v18 }
  0x93   : > { %5353 = vmatprep.mubr.msk.f32.mxu1 %vm291_vm1, %v6754_v17  ;;  %5553 = vmatprep.mubr.msk.f32.mxu0 %vm291_vm1, %v6757_v16 }
  0x96   : > { %5354 = vmatmul.mubr.msk.f32.gmra.mrb[28].mxu1 %vm291_vm1, %v6768_v15  ;;  %5554 = vmatmul.mubr.msk.f32.gmra.mrb[28].mxu0 %vm291_vm1, %v6771_v14 }
  0x97   : > { %5356 = vmatprep.mubr.msk.f32.mxu1 %vm291_vm1, %v6774_v13  ;;  %5556 = vmatprep.mubr.msk.f32.mxu0 %vm291_vm1, %v6777_v12  ;;  %v6808_v12 = vld [vmem:[%s7377_s1 + $0x20] sm:$0x7] }
  0x9a   : > { %5357 = vmatmul.mubr.msk.f32.gmra.mrb[30].mxu1 %vm291_vm1, %v6788_v11  ;;  %5557 = vmatmul.mubr.msk.f32.gmra.mrb[30].mxu0 %vm291_vm1, %v6791_v48  ;;  %v7456_v48 = vld [vmem:[#allocation36_spill] sm:$0xff] }
  0x9b   : > { %5361 = vmatprep.mubr.msk.f32.mxu1 %vm291_vm1, %v941_v8  ;;  %5561 = vmatprep.mubr.msk.f32.mxu0 %vm291_vm1, %v6508_v50  ;;  %v6917_v8 = vld [vmem:[%s6231_s17 + $0x180] sm:$0xff] }
  0x9e   : > { %5362 = vmatmul.mubr.msk.f32.vlgmr.msra.gmra.mrb[0].mxu1 %vm291_vm1, %v942_v44  ;;  %5562 = vmatmul.mubr.msk.f32.vlgmr.msra.gmra.mrb[0].mxu0 %vm291_vm1, %v6528_v52  ;;  %v4596_v44 = vld [vmem:[%s6231_s17 + $0x1a0] sm:$0xff] }
  0x9f   : > { %5610 = vmatpush3.msk.msra.mxu0 %vm388_vm0, %v6488_v46  ;;  %5364 = vmatprep.mubr.msk.f32.mxu1 %vm291_vm1, %v6463_v41  ;;  %v6928_v41 = vld [vmem:[%s6231_s17 + $0x188] sm:$0xff]  ;;  %v7454_v46 = vld [vmem:[#allocation35_spill] sm:$0xff] }
  0xa0   : > { %5564 = vmatprep.mubr.msk.f32.mxu0 %vm291_vm1, %v6534_v54  ;;  %5410 = vmatpush3.msk.msra.mxu1 %vm388_vm0, %v6493_v47  ;;  %v7455_v47 = vld [vmem:[#allocation5_spill] sm:$0xff] }
  0xa1   : > { %5659 = vmatprep.subr.msk.mxu0 %vm388_vm0, %v6808_v12 }
  0xa2   : > { %5365 = vmatmul.mubr.msk.f32.gmra.mrb[2].mxu1 %vm291_vm1, %v6474_v43  ;;  %5565 = vmatmul.mubr.msk.f32.gmra.mrb[2].mxu0 %vm291_vm1, %v6548_v56  ;;  %v4595_v43 = vld [vmem:[%s6231_s17 + $0x198] sm:$0xff] }
  0xa3   : > { %5367 = vmatprep.mubr.msk.f32.mxu1 %vm291_vm1, %v6480_v45  ;;  %5567 = vmatprep.mubr.msk.f32.mxu0 %vm291_vm1, %v6554_v58 }
  0xa6   : > { %5368 = vmatmul.mubr.msk.f32.gmra.mrb[4].mxu1 %vm291_vm1, %v6503_v49  ;;  %5568 = vmatmul.mubr.msk.f32.gmra.mrb[4].mxu0 %vm291_vm1, %v6568_v60 }
  0xa7   : > { %5370 = vmatprep.mubr.msk.f32.mxu1 %vm291_vm1, %v6511_v51  ;;  %5570 = vmatprep.mubr.msk.f32.mxu0 %vm291_vm1, %v6574_v62 }
  0xaa   : > { %5371 = vmatmul.mubr.msk.f32.gmra.mrb[6].mxu1 %vm291_vm1, %v6531_v53  ;;  %5571 = vmatmul.mubr.msk.f32.gmra.mrb[6].mxu0 %vm291_vm1, %v6588_v0 }
  0xab   : > { %5373 = vmatprep.mubr.msk.f32.mxu1 %vm291_vm1, %v6537_v55  ;;  %5573 = vmatprep.mubr.msk.f32.mxu0 %vm291_vm1, %v6594_v2 }
  0xae   : > { %5374 = vmatmul.mubr.msk.f32.gmra.mrb[8].mxu1 %vm291_vm1, %v6551_v57  ;;  %5574 = vmatmul.mubr.msk.f32.gmra.mrb[8].mxu0 %vm291_vm1, %v6608_v4 }
  0xaf   : > { %5376 = vmatprep.mubr.msk.f32.mxu1 %vm291_vm1, %v6557_v59  ;;  %5576 = vmatprep.mubr.msk.f32.mxu0 %vm291_vm1, %v6614_v6 }
  0xb2   : > { %5377 = vmatmul.mubr.msk.f32.gmra.mrb[10].mxu1 %vm291_vm1, %v6571_v61  ;;  %5577 = vmatmul.mubr.msk.f32.gmra.mrb[10].mxu0 %vm291_vm1, %v6628_v9 }
  0xb3   : > { %5379 = vmatprep.mubr.msk.f32.mxu1 %vm291_vm1, %v6577_v63  ;;  %5579 = vmatprep.mubr.msk.f32.mxu0 %vm291_vm1, %v6634_v40 }
  0xb6   : > { %5380 = vmatmul.mubr.msk.f32.gmra.mrb[12].mxu1 %vm291_vm1, %v6591_v1  ;;  %5580 = vmatmul.mubr.msk.f32.gmra.mrb[12].mxu0 %vm291_vm1, %v6648_v39 }
  0xb7   : > { %5382 = vmatprep.mubr.msk.f32.mxu1 %vm291_vm1, %v6597_v3  ;;  %5582 = vmatprep.mubr.msk.f32.mxu0 %vm291_vm1, %v6654_v37 }
  0xba   : > { %5383 = vmatmul.mubr.msk.f32.gmra.mrb[14].mxu1 %vm291_vm1, %v6611_v5  ;;  %5583 = vmatmul.mubr.msk.f32.gmra.mrb[14].mxu0 %vm291_vm1, %v6668_v35 }
  0xbb   : > { %5385 = vmatprep.mubr.msk.f32.mxu1 %vm291_vm1, %v6617_v7  ;;  %5585 = vmatprep.mubr.msk.f32.mxu0 %vm291_vm1, %v6674_v33 }
  0xbe   : > { %5386 = vmatmul.mubr.msk.f32.gmra.mrb[16].mxu1 %vm291_vm1, %v6631_v10  ;;  %5586 = vmatmul.mubr.msk.f32.gmra.mrb[16].mxu0 %vm291_vm1, %v6688_v31 }
  0xbf   : > { %5388 = vmatprep.mubr.msk.f32.mxu1 %vm291_vm1, %v6637_v42  ;;  %5588 = vmatprep.mubr.msk.f32.mxu0 %vm291_vm1, %v6694_v29 }
  0xc2   : > { %5389 = vmatmul.mubr.msk.f32.gmra.mrb[18].mxu1 %vm291_vm1, %v6651_v38  ;;  %5589 = vmatmul.mubr.msk.f32.gmra.mrb[18].mxu0 %vm291_vm1, %v6708_v27 }
  0xc3   : > { %5391 = vmatprep.mubr.msk.f32.mxu1 %vm291_vm1, %v6657_v36  ;;  %5591 = vmatprep.mubr.msk.f32.mxu0 %vm291_vm1, %v6714_v25 }
  0xc6   : > { %5392 = vmatmul.mubr.msk.f32.gmra.mrb[20].mxu1 %vm291_vm1, %v6671_v34  ;;  %5592 = vmatmul.mubr.msk.f32.gmra.mrb[20].mxu0 %vm291_vm1, %v6728_v23 }
  0xc7   : > { %5394 = vmatprep.mubr.msk.f32.mxu1 %vm291_vm1, %v6677_v32  ;;  %5594 = vmatprep.mubr.msk.f32.mxu0 %vm291_vm1, %v6734_v21 }
  0xca   : > { %5395 = vmatmul.mubr.msk.f32.gmra.mrb[22].mxu1 %vm291_vm1, %v6691_v30  ;;  %5595 = vmatmul.mubr.msk.f32.gmra.mrb[22].mxu0 %vm291_vm1, %v6748_v19 }
  0xcb   : > { %5397 = vmatprep.mubr.msk.f32.mxu1 %vm291_vm1, %v6697_v28  ;;  %5597 = vmatprep.mubr.msk.f32.mxu0 %vm291_vm1, %v6754_v17 }
  0xce   : > { %5398 = vmatmul.mubr.msk.f32.gmra.mrb[24].mxu1 %vm291_vm1, %v6711_v26  ;;  %5598 = vmatmul.mubr.msk.f32.gmra.mrb[24].mxu0 %vm291_vm1, %v6768_v15 }
  0xcf   : > { %5400 = vmatprep.mubr.msk.f32.mxu1 %vm291_vm1, %v6717_v24  ;;  %5600 = vmatprep.mubr.msk.f32.mxu0 %vm291_vm1, %v6774_v13 }
  0xd2   : > { %5401 = vmatmul.mubr.msk.f32.gmra.mrb[26].mxu1 %vm291_vm1, %v6731_v22  ;;  %5601 = vmatmul.mubr.msk.f32.gmra.mrb[26].mxu0 %vm291_vm1, %v6788_v11 }
  0xd3   : > { %5403 = vmatprep.mubr.msk.f32.mxu1 %vm291_vm1, %v6737_v20  ;;  %5603 = vmatprep.mubr.msk.f32.mxu0 %vm291_vm1, %v6917_v8 }
  0xd6   : > { %5404 = vmatmul.mubr.msk.f32.gmra.mrb[28].mxu1 %vm291_vm1, %v6751_v18  ;;  %5604 = vmatmul.mubr.msk.f32.gmra.mrb[28].mxu0 %vm291_vm1, %v6928_v41  ;;  %v7457_v18 = vld [vmem:[#allocation6_spill] sm:$0xff] }
  0xd7   : > { %5406 = vmatprep.mubr.msk.f32.mxu1 %vm291_vm1, %v6757_v16  ;;  %5606 = vmatprep.mubr.msk.f32.mxu0 %vm291_vm1, %v4595_v43  ;;  %v7458_v43 = vld [vmem:[#allocation7_spill] sm:$0xff] }
  0xda   : > { %5407 = vmatmul.mubr.msk.f32.gmra.mrb[30].mxu1 %vm291_vm1, %v6771_v14  ;;  %5607 = vmatmul.mubr.msk.f32.gmra.mrb[30].mxu0 %vm291_vm1, %v4596_v44  ;;  %v7459_v44 = vld [vmem:[#allocation8_spill] sm:$0xff] }
  0xdb   : > { %5411 = vmatprep.mubr.msk.f32.mxu1 %vm291_vm1, %v7454_v46  ;;  %5611 = vmatprep.mubr.msk.f32.mxu0 %vm291_vm1, %v7455_v47 }
  0xde   : > { %5412 = vmatmul.mubr.msk.f32.vlgmr.msra.gmra.mrb[0].mxu1 %vm291_vm1, %v7456_v48  ;;  %5612 = vmatmul.mubr.msk.f32.vlgmr.msra.gmra.mrb[0].mxu0 %vm291_vm1, %v7457_v18  ;;  %v7460_v48 = vld [vmem:[#allocation9_spill] sm:$0xff]  ;;  %v7462_v18 = vld [vmem:[#allocation11_spill] sm:$0xff] }
  0xdf   : > { %5660 = vmatpush3.msk.msra.mxu0 %vm388_vm0, %v6808_v12  ;;  %5414 = vmatprep.mubr.msk.f32.mxu1 %vm291_vm1, %v6508_v50  ;;  %v7461_v12 = vld [vmem:[#allocation10_spill] sm:$0xff]  ;;  %v7463_v50 = vld [vmem:[#allocation12_spill] sm:$0xff] }
  0xe0   : > { %5614 = vmatprep.mubr.msk.f32.mxu0 %vm291_vm1, %v7458_v43 }
  0xe2   : > { %5415 = vmatmul.mubr.msk.f32.gmra.mrb[2].mxu1 %vm291_vm1, %v6528_v52  ;;  %5615 = vmatmul.mubr.msk.f32.gmra.mrb[2].mxu0 %vm291_vm1, %v7459_v44  ;;  %v7464_v52 = vld [vmem:[#allocation13_spill] sm:$0xff] }
  0xe3   : > { %5417 = vmatprep.mubr.msk.f32.mxu1 %vm291_vm1, %v6534_v54  ;;  %5617 = vmatprep.mubr.msk.f32.mxu0 %vm291_vm1, %v7460_v48  ;;  %v7465_v54 = vld [vmem:[#allocation14_spill] sm:$0xff] }
  0xe6   : > { %5418 = vmatmul.mubr.msk.f32.gmra.mrb[4].mxu1 %vm291_vm1, %v6548_v56  ;;  %5618 = vmatmul.mubr.msk.f32.gmra.mrb[4].mxu0 %vm291_vm1, %v7461_v12  ;;  %v7466_v56 = vld [vmem:[#allocation15_spill] sm:$0xff] }
  0xe7   : > { %5420 = vmatprep.mubr.msk.f32.mxu1 %vm291_vm1, %v6554_v58  ;;  %5620 = vmatprep.mubr.msk.f32.mxu0 %vm291_vm1, %v7462_v18  ;;  %v7467_v58 = vld [vmem:[#allocation16_spill] sm:$0xff] }
  0xea   : > { %5421 = vmatmul.mubr.msk.f32.gmra.mrb[6].mxu1 %vm291_vm1, %v6568_v60  ;;  %5621 = vmatmul.mubr.msk.f32.gmra.mrb[6].mxu0 %vm291_vm1, %v7463_v50  ;;  %v7468_v60 = vld [vmem:[#allocation17_spill] sm:$0xff] }
  0xeb   : > { %5423 = vmatprep.mubr.msk.f32.mxu1 %vm291_vm1, %v6574_v62  ;;  %5623 = vmatprep.mubr.msk.f32.mxu0 %vm291_vm1, %v7464_v52  ;;  %v7469_v62 = vld [vmem:[#allocation18_spill] sm:$0xff] }
  0xee   : > { %5424 = vmatmul.mubr.msk.f32.gmra.mrb[8].mxu1 %vm291_vm1, %v6588_v0  ;;  %5624 = vmatmul.mubr.msk.f32.gmra.mrb[8].mxu0 %vm291_vm1, %v7465_v54  ;;  %v7470_v0 = vld [vmem:[#allocation19_spill] sm:$0xff] }
  0xef   : > { %5426 = vmatprep.mubr.msk.f32.mxu1 %vm291_vm1, %v6594_v2  ;;  %5626 = vmatprep.mubr.msk.f32.mxu0 %vm291_vm1, %v7466_v56  ;;  %v7471_v2 = vld [vmem:[#allocation20_spill] sm:$0xff] }
  0xf2   : > { %5427 = vmatmul.mubr.msk.f32.gmra.mrb[10].mxu1 %vm291_vm1, %v6608_v4  ;;  %5627 = vmatmul.mubr.msk.f32.gmra.mrb[10].mxu0 %vm291_vm1, %v7467_v58  ;;  %v7472_v4 = vld [vmem:[#allocation21_spill] sm:$0xff] }
  0xf3   : > { %5429 = vmatprep.mubr.msk.f32.mxu1 %vm291_vm1, %v6614_v6  ;;  %5629 = vmatprep.mubr.msk.f32.mxu0 %vm291_vm1, %v7468_v60  ;;  %v7473_v6 = vld [vmem:[#allocation22_spill] sm:$0xff] }
  0xf6   : > { %5430 = vmatmul.mubr.msk.f32.gmra.mrb[12].mxu1 %vm291_vm1, %v6628_v9  ;;  %5630 = vmatmul.mubr.msk.f32.gmra.mrb[12].mxu0 %vm291_vm1, %v7469_v62  ;;  %v7474_v9 = vld [vmem:[#allocation23_spill] sm:$0xff] }
  0xf7   : > { %5432 = vmatprep.mubr.msk.f32.mxu1 %vm291_vm1, %v6634_v40  ;;  %5632 = vmatprep.mubr.msk.f32.mxu0 %vm291_vm1, %v7470_v0  ;;  %v7209_v0 = vld [vmem:[%s7378_s2] ss:$0 sm:$0xff] }
  0xfa   : > { %5433 = vmatmul.mubr.msk.f32.gmra.mrb[14].mxu1 %vm291_vm1, %v6648_v39  ;;  %5633 = vmatmul.mubr.msk.f32.gmra.mrb[14].mxu0 %vm291_vm1, %v7471_v2  ;;  %v7475_v39 = vld [vmem:[#allocation24_spill] sm:$0xff] }
  0xfb   : > { %5435 = vmatprep.mubr.msk.f32.mxu1 %vm291_vm1, %v6654_v37  ;;  %5635 = vmatprep.mubr.msk.f32.mxu0 %vm291_vm1, %v7472_v4  ;;  %v7476_v37 = vld [vmem:[#allocation25_spill] sm:$0xff] }
  0xfe   : > { %5436 = vmatmul.mubr.msk.f32.gmra.mrb[16].mxu1 %vm291_vm1, %v6668_v35  ;;  %5636 = vmatmul.mubr.msk.f32.gmra.mrb[16].mxu0 %vm291_vm1, %v7473_v6  ;;  %v7477_v35 = vld [vmem:[#allocation26_spill] sm:$0xff] }
  0xff   : > { %5438 = vmatprep.mubr.msk.f32.mxu1 %vm291_vm1, %v6674_v33  ;;  %5638 = vmatprep.mubr.msk.f32.mxu0 %vm291_vm1, %v7474_v9  ;;  %v7483_v33 = vld [vmem:[#allocation32_spill] sm:$0xff] }
 0x102   : > { %5439 = vmatmul.mubr.msk.f32.gmra.mrb[18].mxu1 %vm291_vm1, %v6688_v31  ;;  %5639 = vmatmul.mubr.msk.f32.gmra.mrb[18].mxu0 %vm291_vm1, %v7475_v39  ;;  %v7478_v31 = vld [vmem:[#allocation27_spill] sm:$0xff] }
 0x103   : > { %5441 = vmatprep.mubr.msk.f32.mxu1 %vm291_vm1, %v6694_v29  ;;  %5641 = vmatprep.mubr.msk.f32.mxu0 %vm291_vm1, %v7476_v37  ;;  %v7479_v29 = vld [vmem:[#allocation28_spill] sm:$0xff] }
 0x106   : > { %5442 = vmatmul.mubr.msk.f32.gmra.mrb[20].mxu1 %vm291_vm1, %v6708_v27  ;;  %5642 = vmatmul.mubr.msk.f32.gmra.mrb[20].mxu0 %vm291_vm1, %v7477_v35  ;;  %v7480_v27 = vld [vmem:[#allocation29_spill] sm:$0xff] }
 0x107   : > { %5444 = vmatprep.mubr.msk.f32.mxu1 %vm291_vm1, %v6714_v25  ;;  %5644 = vmatprep.mubr.msk.f32.mxu0 %vm291_vm1, %v7478_v31  ;;  %v7481_v25 = vld [vmem:[#allocation30_spill] sm:$0xff] }
 0x10a   : > { %5445 = vmatmul.mubr.msk.f32.gmra.mrb[22].mxu1 %vm291_vm1, %v6728_v23  ;;  %5645 = vmatmul.mubr.msk.f32.gmra.mrb[22].mxu0 %vm291_vm1, %v7479_v29  ;;  %v7482_v23 = vld [vmem:[#allocation31_spill] sm:$0xff] }
 0x10b   : > { %5447 = vmatprep.mubr.msk.f32.mxu1 %vm291_vm1, %v6734_v21  ;;  %5647 = vmatprep.mubr.msk.f32.mxu0 %vm291_vm1, %v7480_v27  ;;  %v7484_v21 = vld [vmem:[#allocation33_spill] sm:$0xff] }
 0x10e   : > { %5448 = vmatmul.mubr.msk.f32.gmra.mrb[24].mxu1 %vm291_vm1, %v6748_v19  ;;  %5648 = vmatmul.mubr.msk.f32.gmra.mrb[24].mxu0 %vm291_vm1, %v7481_v25  ;;  %v4661_v19 = vld [vmem:[%s6231_s17 + $0x199] sm:$0xff] }
 0x10f   : > { %5450 = vmatprep.mubr.msk.f32.mxu1 %vm291_vm1, %v6754_v17  ;;  %5650 = vmatprep.mubr.msk.f32.mxu0 %vm291_vm1, %v7482_v23  ;;  %v7485_v17 = vld [vmem:[#allocation34_spill] sm:$0xff] }
 0x112   : > { %5451 = vmatmul.mubr.msk.f32.gmra.mrb[26].mxu1 %vm291_vm1, %v6768_v15  ;;  %5651 = vmatmul.mubr.msk.f32.gmra.mrb[26].mxu0 %vm291_vm1, %v7483_v33  ;;  %v4662_v15 = vld [vmem:[%s6231_s17 + $0x1a1] sm:$0xff] }
 0x113   : > { %5453 = vmatprep.mubr.msk.f32.mxu1 %vm291_vm1, %v6774_v13  ;;  %5653 = vmatprep.mubr.msk.f32.mxu0 %vm291_vm1, %v7484_v21  ;;  %v6056_v13 = vld [vmem:[%s7379_s3 + $0x8] sm:$0xff]  }
 0x116   : > { %5454 = vmatmul.mubr.msk.f32.gmra.mrb[28].mxu1 %vm291_vm1, %v6788_v11  ;;  %5654 = vmatmul.mubr.msk.f32.gmra.mrb[28].mxu0 %vm291_vm1, %v7485_v17  ;;  %v6055_v11 = vld [vmem:[%s7379_s3] sm:$0xff]  }
 0x117   : > { %5456 = vmatprep.mubr.msk.f32.mxu1 %vm291_vm1, %v6917_v8  ;;  %5656 = vmatprep.mubr.msk.f32.mxu0 %vm291_vm1, %v4661_v19 }
 0x118   : > { %5709 = vmatprep.subr.bf16.mxu1 %v6055_v11 }
 0x119   : > { %5710 = vmatpush3.bf16.msra.mxu1 %v6055_v11 }
 0x11a   : > { %5457 = vmatmul.mubr.msk.f32.gmra.mrb[30].mxu1 %vm291_vm1, %v6928_v41  ;;  %5657 = vmatmul.mubr.msk.f32.gmra.mrb[30].mxu0 %vm291_vm1, %v4662_v15 }
 0x11b   : > { %5661 = vmatprep.mubr.msk.f32.mxu0 %vm291_vm1, %v6480_v45  ;;  %5711 = vmatprep.subr.bf16.mxu1 %v6056_v13 }
 0x11d   : > { %5712 = vmatpush3.bf16.msra.mxu1 %v6056_v13 }
 0x11e   : > { %5662 = vmatmul.mubr.msk.f32.vlgmr.msra.gmra.mrb[0].mxu0 %vm291_vm1, %v6503_v49 }
 0x11f   : > { %5664 = vmatprep.mubr.msk.f32.mxu0 %vm291_vm1, %v6511_v51 }
 0x122   : > { %5665 = vmatmul.mubr.msk.f32.gmra.mrb[2].mxu0 %vm291_vm1, %v6531_v53 }
 0x123   : > { %5667 = vmatprep.mubr.msk.f32.mxu0 %vm291_vm1, %v6537_v55 }
 0x126   : > { %5668 = vmatmul.mubr.msk.f32.gmra.mrb[4].mxu0 %vm291_vm1, %v6551_v57 }
 0x127   : > { %5670 = vmatprep.mubr.msk.f32.mxu0 %vm291_vm1, %v6557_v59 }
 0x12a   : > { %5671 = vmatmul.mubr.msk.f32.gmra.mrb[6].mxu0 %vm291_vm1, %v6571_v61 }
 0x12b   : > { %5673 = vmatprep.mubr.msk.f32.mxu0 %vm291_vm1, %v6577_v63 }
 0x12e   : > { %5674 = vmatmul.mubr.msk.f32.gmra.mrb[8].mxu0 %vm291_vm1, %v6591_v1 }
 0x12f   : > { %5676 = vmatprep.mubr.msk.f32.mxu0 %vm291_vm1, %v6597_v3 }
 0x132   : > { %5677 = vmatmul.mubr.msk.f32.gmra.mrb[10].mxu0 %vm291_vm1, %v6611_v5 }
 0x133   : > { %5679 = vmatprep.mubr.msk.f32.mxu0 %vm291_vm1, %v6617_v7 }
 0x136   : > { %5680 = vmatmul.mubr.msk.f32.gmra.mrb[12].mxu0 %vm291_vm1, %v6631_v10 }
 0x137   : > { %5682 = vmatprep.mubr.msk.f32.mxu0 %vm291_vm1, %v6637_v42 }
 0x13a   : > { %5683 = vmatmul.mubr.msk.f32.gmra.mrb[14].mxu0 %vm291_vm1, %v6651_v38 }
 0x13b   : > { %5685 = vmatprep.mubr.msk.f32.mxu0 %vm291_vm1, %v6657_v36  ;;  %v6062_v36 = vld [vmem:[%s7379_s3 + $0x38] sm:$0xff]  }
 0x13e   : > { %5686 = vmatmul.mubr.msk.f32.gmra.mrb[16].mxu0 %vm291_vm1, %v6671_v34  ;;  %v6061_v34 = vld [vmem:[%s7379_s3 + $0x30] sm:$0xff]  }
 0x13f   : > { %5688 = vmatprep.mubr.msk.f32.mxu0 %vm291_vm1, %v6677_v32  ;;  %v4728_v32 = vld [vmem:[%s6231_s17 + $0x1a2] sm:$0xff] }
 0x142   : > { %5689 = vmatmul.mubr.msk.f32.gmra.mrb[18].mxu0 %vm291_vm1, %v6691_v30  ;;  %v6058_v30 = vld [vmem:[%s7379_s3 + $0x18] sm:$0xff]  }
 0x143   : > { %5691 = vmatprep.mubr.msk.f32.mxu0 %vm291_vm1, %v6697_v28  ;;  %v7486_v28 = vld [vmem:[#allocation37_spill] sm:$0xff] }
 0x146   : > { %5692 = vmatmul.mubr.msk.f32.gmra.mrb[20].mxu0 %vm291_vm1, %v6711_v26  ;;  %v6057_v26 = vld [vmem:[%s7379_s3 + $0x10] sm:$0xff]  }
 0x147   : > { %5694 = vmatprep.mubr.msk.f32.mxu0 %vm291_vm1, %v6717_v24  ;;  %5713 = vmatprep.subr.bf16.mxu1 %v6057_v26  ;;  %v7487_v24 = vld [vmem:[#allocation38_spill] sm:$0xff] }
 0x148   : > { %5714 = vmatpush3.bf16.msra.mxu1 %v6057_v26 }
 0x149   : > { %5715 = vmatprep.subr.bf16.mxu1 %v6058_v30 }
 0x14a   : > { %5695 = vmatmul.mubr.msk.f32.gmra.mrb[22].mxu0 %vm291_vm1, %v6731_v22  ;;  %v4727_v22 = vld [vmem:[%s6231_s17 + $0x19a] sm:$0xff]  ;;  %s6067_s17 = sshll.u32 %s6127_s10, 4  ;;  %s6068_s17 = int_to_ptr.vmem [resolvable:$false] %s6067_s17 }
 0x14b   : > { %5697 = vmatprep.mubr.msk.f32.mxu0 %vm291_vm1, %v6737_v20  ;;  %v7488_v20 = vld [vmem:[#allocation39_spill] sm:$0xff]  ;;  %s6069_s11 = scalar_lea.vmem %s6068_s17, 4096  ;;  %p6070_p0 = scmp.lt.s32.totalorder %s7329_s30, %s6068_s17 }
 0x14c   : > { %5716 = vmatpush3.bf16.msra.mxu1 %v6058_v30  ;;  %p6071_p1 = scmp.lt.s32.totalorder %s6069_s11, %s6063_s9 }
 0x14e   : > { %5698 = vmatmul.mubr.msk.f32.gmra.mrb[24].mxu0 %vm291_vm1, %v7486_v28  ;;  %p6072_p2 = por %p6071_p1, %p6070_p0 }
 0x14f   : > { %5700 = vmatprep.mubr.msk.f32.mxu0 %vm291_vm1, %v6757_v16  ;;  %v6060_v16 = vld [vmem:[%s7379_s3 + $0x28] sm:$0xff]  }
 0x150   : > { %p6073_p3 = pnand %p6072_p2, %p6066_p13 }
 0x152   : > { %5701 = vmatmul.mubr.msk.f32.gmra.mrb[26].mxu0 %vm291_vm1, %v6771_v14  ;;  %v6059_v14 = vld [vmem:[%s7379_s3 + $0x20] sm:$0xff]  }
 0x153   : > { %5703 = vmatprep.mubr.msk.f32.mxu0 %vm291_vm1, %v7487_v24  ;;  %5717 = vmatprep.subr.bf16.mxu1 %v6059_v14 }
 0x154   : > { %5718 = vmatpush3.bf16.msra.mxu1 %v6059_v14 }
 0x155   : > { %5719 = vmatprep.subr.bf16.mxu1 %v6060_v16 }
 0x156   : > { %5704 = vmatmul.mubr.msk.f32.gmra.mrb[28].mxu0 %vm291_vm1, %v7488_v20 }
 0x157   : > { %5706 = vmatprep.mubr.msk.f32.mxu0 %vm291_vm1, %v4727_v22 }
 0x158   : > { %5720 = vmatpush3.bf16.msra.mxu1 %v6060_v16 }
 0x159   : > { %5721 = vmatprep.subr.bf16.mxu1 %v6061_v34 }
 0x15a   : > { %5707 = vmatmul.mubr.msk.f32.gmra.mrb[30].mxu0 %vm291_vm1, %v4728_v32 }
 0x15c   : > { %5722 = vmatpush3.bf16.msra.mxu1 %v6061_v34 }
 0x15d   : > { %5723 = vmatprep.subr.bf16.mxu1 %v6062_v36 }
 0x160   : > { %5724 = vmatpush3.bf16.msra.mxu1 %v6062_v36 }
 0x1b1   : > { %v5413_v38 = vpop.f32.mrb[0].mxu1 }
 0x1b2   : > { %v1531_v45 = vpop.f32.mrb[1].mxu1 }
 0x1b5   : > { %v5416_v49 = vpop.f32.mrb[2].mxu1 }
 0x1b6   : > { %v1541_v51 = vpop.f32.mrb[3].mxu1 }
 0x1b9   : > { %v5419_v53 = vpop.f32.mrb[4].mxu1 }
 0x1ba   : > { %v1551_v55 = vpop.f32.mrb[5].mxu1 }
 0x1bd   : > { %v5422_v57 = vpop.f32.mrb[6].mxu1 }
 0x1be   : > { %v1561_v59 = vpop.f32.mrb[7].mxu1 }
 0x1c1   : > { %v5425_v61 = vpop.f32.mrb[8].mxu1 }
 0x1c2   : > { %v7160_v63 = vpop.f32.mrb[9].mxu1 }
 0x1c5   : > { %v7162_v1 = vpop.f32.mrb[10].mxu1 }
 0x1c6   : > { %v7164_v3 = vpop.f32.mrb[11].mxu1 }
 0x1c9   : > { %v7166_v5 = vpop.f32.mrb[12].mxu1 }
 0x1ca   : > { %v7168_v7 = vpop.f32.mrb[13].mxu1 }
 0x1cd   : > { %v7170_v10 = vpop.f32.mrb[14].mxu1 }
 0x1ce   : > { %v7172_v40 = vpop.f32.mrb[15].mxu1 }
 0x1d1   : > { %v7174_v42 = vpop.f32.mrb[16].mxu1 }
 0x1d2   : > { %v7176_v8 = vpop.f32.mrb[17].mxu1 }
 0x1d5   : > { %v7178_v41 = vpop.f32.mrb[18].mxu1 }
 0x1d6   : > { %v7180_v46 = vpop.f32.mrb[19].mxu1 }
 0x1d9   : > { %v7182_v47 = vpop.f32.mrb[20].mxu1 }
 0x1da   : > { %v7184_v43 = vpop.f32.mrb[21].mxu1 }
 0x1dd   : > { %v7186_v44 = vpop.f32.mrb[22].mxu1 }
 0x1de   : > { %v7188_v48 = vpop.f32.mrb[23].mxu1 }
 0x1e1   : > { %v7190_v12 = vpop.f32.mrb[24].mxu1 }
 0x1e2   : > { %v7192_v18 = vpop.f32.mrb[25].mxu1 }
 0x1e5   : > { %v7194_v50 = vpop.f32.mrb[26].mxu1 }
 0x1e6   : > { %v7196_v52 = vpop.f32.mrb[27].mxu1 }
 0x1e9   : > { %v7198_v54 = vpop.f32.mrb[28].mxu1 }
 0x1ea   : > { %v7200_v56 = vpop.f32.mrb[29].mxu1 }
 0x1ed   : > { %v7202_v58 = vpop.f32.mrb[30].mxu1 }
 0x1ee   : > { %v7204_v60 = vpop.f32.mrb[31].mxu1 }
 0x1f1   : > { %v5663_v62 = vpop.f32.mrb[0].mxu0 }
 0x1f2   : > { %v5757_v2 = vadd.f32 %v5663_v62, %v5413_v38  ;;  %v3482_v4 = vpop.f32.mrb[1].mxu0 }
 0x1f3   : > { %v5758_v6 = vadd.f32 %v3482_v4, %v1531_v45 }
 0x1f4   : > { %v3681_v9 = vadd.f32 %v5757_v2, %v7209_v0 }
 0x1f5   : > { %v3680_v39 = vadd.f32 %v5758_v6, %v7209_v0  ;;  %v5666_v37 = vpop.f32.mrb[2].mxu0 }
 0x1f6   : > { %v3713_v35 = vmax.f32 %v3681_v9, 0.0  ;;  %v5759_v31 = vadd.f32 %v5666_v37, %v5416_v49  ;;  %v3492_v29 = vpop.f32.mrb[3].mxu0 }
 0x1f7   : > { %v3712_v27 = vmax.f32 %v3680_v39, 0.0  ;;  %v5760_v25 = vadd.f32 %v3492_v29, %v1541_v51 }
 0x1f8   : > { %v3683_v23 = vadd.f32 %v5759_v31, %v7209_v0 }
 0x1f9   : > { %v3682_v33 = vadd.f32 %v5760_v25, %v7209_v0  ;;  %v5669_v21 = vpop.f32.mrb[4].mxu0  ;;  %v3744_v19 = vpack.c.bf16 %v3713_v35, %v3712_v27 }
 0x1fa   : > { %v3715_v17 = vmax.f32 %v3683_v23, 0.0  ;;  %v5761_v15 = vadd.f32 %v5669_v21, %v5419_v53  ;;  %v3502_v11 = vpop.f32.mrb[5].mxu0 }
 0x1fb   : > { %v3714_v13 = vmax.f32 %v3682_v33, 0.0  ;;  %v5762_v28 = vadd.f32 %v3502_v11, %v1551_v55  ;;  %5725 = vmatprep.mubr.bf16.mxu1 %v3744_v19 }
 0x1fc   : > { %v3685_v26 = vadd.f32 %v5761_v15, %v7209_v0 }
 0x1fd   : > { %v3745_v24 = vpack.c.bf16 %v3715_v17, %v3714_v13  ;;  %v3684_v22 = vadd.f32 %v5762_v28, %v7209_v0  ;;  %v5672_v20 = vpop.f32.mrb[6].mxu0 }
 0x1fe   : > { %v3717_v30 = vmax.f32 %v3685_v26, 0.0  ;;  %v5763_v32 = vadd.f32 %v5672_v20, %v5422_v57  ;;  %v3512_v14 = vpop.f32.mrb[7].mxu0 }
 0x1ff   : > { %v3716_v16 = vmax.f32 %v3684_v22, 0.0  ;;  %v5764_v34 = vadd.f32 %v3512_v14, %v1561_v59  ;;  %5726 = vmatmul.mubr.bf16.vlgmr.msra.gmra.mrb[32].mxu1 %v3745_v24 }
 0x200   : > { %v3687_v36 = vadd.f32 %v5763_v32, %v7209_v0 }
 0x201   : > { %v3686_v38 = vadd.f32 %v5764_v34, %v7209_v0  ;;  %v5675_v45 = vpop.f32.mrb[8].mxu0  ;;  %v3746_v49 = vpack.c.bf16 %v3717_v30, %v3716_v16 }
 0x202   : > { %v3719_v51 = vmax.f32 %v3687_v36, 0.0  ;;  %v5765_v53 = vadd.f32 %v5675_v45, %v5425_v61  ;;  %v3522_v55 = vpop.f32.mrb[9].mxu0 }
 0x203   : > { %v3718_v62 = vmax.f32 %v3686_v38, 0.0  ;;  %v5766_v2 = vadd.f32 %v3522_v55, %v7160_v63  ;;  %5729 = vmatprep.mubr.bf16.mxu1 %v3746_v49 }
 0x204   : > { %v3689_v4 = vadd.f32 %v5765_v53, %v7209_v0 }
 0x205   : > { %v3688_v57 = vadd.f32 %v5766_v2, %v7209_v0  ;;  %v5678_v6 = vpop.f32.mrb[10].mxu0  ;;  %v3747_v59 = vpack.c.bf16 %v3719_v51, %v3718_v62 }
 0x206   : > { %v3721_v9 = vmax.f32 %v3689_v4, 0.0  ;;  %v5767_v39 = vadd.f32 %v5678_v6, %v7162_v1  ;;  %v3532_v37 = vpop.f32.mrb[11].mxu0 }
 0x207   : > { %v3720_v35 = vmax.f32 %v3688_v57, 0.0  ;;  %v5768_v31 = vadd.f32 %v3532_v37, %v7164_v3  ;;  %5730 = vmatmul.mubr.bf16.gmra.mrb[36].mxu1 %v3747_v59 }
 0x208   : > { %v3691_v61 = vadd.f32 %v5767_v39, %v7209_v0 }
 0x209   : > { %v3690_v29 = vadd.f32 %v5768_v31, %v7209_v0  ;;  %v5681_v63 = vpop.f32.mrb[12].mxu0  ;;  %v3748_v27 = vpack.c.bf16 %v3721_v9, %v3720_v35 }
 0x20a   : > { %v3723_v25 = vmax.f32 %v3691_v61, 0.0  ;;  %v5769_v23 = vadd.f32 %v5681_v63, %v7166_v5  ;;  %v3542_v33 = vpop.f32.mrb[13].mxu0 }
 0x20b   : > { %v3722_v21 = vmax.f32 %v3690_v29, 0.0  ;;  %v5770_v19 = vadd.f32 %v3542_v33, %v7168_v7  ;;  %5733 = vmatprep.mubr.bf16.mxu1 %v3748_v27 }
 0x20c   : > { %v3693_v1 = vadd.f32 %v5769_v23, %v7209_v0 }
 0x20d   : > { %v3692_v17 = vadd.f32 %v5770_v19, %v7209_v0  ;;  %v5684_v3 = vpop.f32.mrb[14].mxu0  ;;  %v3749_v15 = vpack.c.bf16 %v3723_v25, %v3722_v21 }
 0x20e   : > { %v3725_v11 = vmax.f32 %v3693_v1, 0.0  ;;  %v5771_v13 = vadd.f32 %v5684_v3, %v7170_v10  ;;  %v3552_v28 = vpop.f32.mrb[15].mxu0 }
 0x20f   : > { %v3724_v26 = vmax.f32 %v3692_v17, 0.0  ;;  %v5772_v24 = vadd.f32 %v3552_v28, %v7172_v40  ;;  %5734 = vmatmul.mubr.bf16.gmra.mrb[40].mxu1 %v3749_v15 }
 0x210   : > { %v3695_v5 = vadd.f32 %v5771_v13, %v7209_v0 }
 0x211   : > { %v3694_v22 = vadd.f32 %v5772_v24, %v7209_v0  ;;  %v5687_v7 = vpop.f32.mrb[16].mxu0  ;;  %v3750_v20 = vpack.c.bf16 %v3725_v11, %v3724_v26 }
 0x212   : > { %v3727_v30 = vmax.f32 %v3695_v5, 0.0  ;;  %v5773_v32 = vadd.f32 %v5687_v7, %v7174_v42  ;;  %v3562_v14 = vpop.f32.mrb[17].mxu0 }
 0x213   : > { %v3726_v16 = vmax.f32 %v3694_v22, 0.0  ;;  %v5774_v34 = vadd.f32 %v3562_v14, %v7176_v8  ;;  %5737 = vmatprep.mubr.bf16.mxu1 %v3750_v20 }
 0x214   : > { %v3697_v10 = vadd.f32 %v5773_v32, %v7209_v0 }
 0x215   : > { %v3696_v36 = vadd.f32 %v5774_v34, %v7209_v0  ;;  %v5690_v40 = vpop.f32.mrb[18].mxu0  ;;  %v3751_v38 = vpack.c.bf16 %v3727_v30, %v3726_v16 }
 0x216   : > { %v3729_v45 = vmax.f32 %v3697_v10, 0.0  ;;  %v5775_v49 = vadd.f32 %v5690_v40, %v7178_v41  ;;  %v3572_v51 = vpop.f32.mrb[19].mxu0 }
 0x217   : > { %v3728_v53 = vmax.f32 %v3696_v36, 0.0  ;;  %v5776_v55 = vadd.f32 %v3572_v51, %v7180_v46  ;;  %5738 = vmatmul.mubr.bf16.gmra.mrb[44].mxu1 %v3751_v38 }
 0x218   : > { %v3699_v42 = vadd.f32 %v5775_v49, %v7209_v0 }
 0x219   : > { %v3698_v62 = vadd.f32 %v5776_v55, %v7209_v0  ;;  %v5693_v8 = vpop.f32.mrb[20].mxu0  ;;  %v3752_v2 = vpack.c.bf16 %v3729_v45, %v3728_v53 }
 0x21a   : > { %v3731_v4 = vmax.f32 %v3699_v42, 0.0  ;;  %v5777_v57 = vadd.f32 %v5693_v8, %v7182_v47  ;;  %v3582_v6 = vpop.f32.mrb[21].mxu0 }
 0x21b   : > { %v3730_v59 = vmax.f32 %v3698_v62, 0.0  ;;  %v5778_v9 = vadd.f32 %v3582_v6, %v7184_v43  ;;  %5741 = vmatprep.mubr.bf16.mxu1 %v3752_v2 }
 0x21c   : > { %v3701_v41 = vadd.f32 %v5777_v57, %v7209_v0 }
 0x21d   : > { %v3700_v39 = vadd.f32 %v5778_v9, %v7209_v0  ;;  %v5696_v46 = vpop.f32.mrb[22].mxu0  ;;  %v3753_v37 = vpack.c.bf16 %v3731_v4, %v3730_v59 }
 0x21e   : > { %v3733_v35 = vmax.f32 %v3701_v41, 0.0  ;;  %v5779_v31 = vadd.f32 %v5696_v46, %v7186_v44  ;;  %v3592_v61 = vpop.f32.mrb[23].mxu0 }
 0x21f   : > { %v3732_v29 = vmax.f32 %v3700_v39, 0.0  ;;  %v5780_v63 = vadd.f32 %v3592_v61, %v7188_v48  ;;  %5742 = vmatmul.mubr.bf16.gmra.mrb[48].mxu1 %v3753_v37 }
 0x220   : > { %v3703_v47 = vadd.f32 %v5779_v31, %v7209_v0 }
 0x221   : > { %v3702_v27 = vadd.f32 %v5780_v63, %v7209_v0  ;;  %v5699_v43 = vpop.f32.mrb[24].mxu0  ;;  %v3754_v25 = vpack.c.bf16 %v3733_v35, %v3732_v29 }
 0x222   : > { %v3735_v23 = vmax.f32 %v3703_v47, 0.0  ;;  %v5781_v33 = vadd.f32 %v5699_v43, %v7190_v12  ;;  %v3602_v21 = vpop.f32.mrb[25].mxu0 }
 0x223   : > { %v3734_v19 = vmax.f32 %v3702_v27, 0.0  ;;  %v5782_v1 = vadd.f32 %v3602_v21, %v7192_v18  ;;  %5745 = vmatprep.mubr.bf16.mxu1 %v3754_v25 }
 0x224   : > { %v3705_v44 = vadd.f32 %v5781_v33, %v7209_v0 }
 0x225   : > { %v3704_v17 = vadd.f32 %v5782_v1, %v7209_v0  ;;  %v5702_v48 = vpop.f32.mrb[26].mxu0  ;;  %v3755_v3 = vpack.c.bf16 %v3735_v23, %v3734_v19 }
 0x226   : > { %v3737_v15 = vmax.f32 %v3705_v44, 0.0  ;;  %v5783_v11 = vadd.f32 %v5702_v48, %v7194_v50  ;;  %v3612_v13 = vpop.f32.mrb[27].mxu0 }
 0x227   : > { %v3736_v28 = vmax.f32 %v3704_v17, 0.0  ;;  %v5784_v26 = vadd.f32 %v3612_v13, %v7196_v52  ;;  %5746 = vmatmul.mubr.bf16.gmra.mrb[52].mxu1 %v3755_v3 }
 0x228   : > { %v3707_v12 = vadd.f32 %v5783_v11, %v7209_v0 }
 0x229   : > { %v3706_v24 = vadd.f32 %v5784_v26, %v7209_v0  ;;  %v5705_v18 = vpop.f32.mrb[28].mxu0  ;;  %v3756_v5 = vpack.c.bf16 %v3737_v15, %v3736_v28 }
 0x22a   : > { %v3739_v22 = vmax.f32 %v3707_v12, 0.0  ;;  %v5785_v7 = vadd.f32 %v5705_v18, %v7198_v54  ;;  %v3622_v20 = vpop.f32.mrb[29].mxu0 }
 0x22b   : > { %v3738_v30 = vmax.f32 %v3706_v24, 0.0  ;;  %v5786_v32 = vadd.f32 %v3622_v20, %v7200_v56  ;;  %5749 = vmatprep.mubr.bf16.mxu1 %v3756_v5 }
 0x22c   : > { %v3709_v50 = vadd.f32 %v5785_v7, %v7209_v0 }
 0x22d   : > { %v3708_v14 = vadd.f32 %v5786_v32, %v7209_v0  ;;  %v5708_v52 = vpop.f32.mrb[30].mxu0  ;;  %v3757_v16 = vpack.c.bf16 %v3739_v22, %v3738_v30 }
 0x22e   : > { %v3741_v34 = vmax.f32 %v3709_v50, 0.0  ;;  %v5787_v10 = vadd.f32 %v5708_v52, %v7202_v58  ;;  %v3632_v36 = vpop.f32.mrb[31].mxu0  ;;  %v7269_v58 = vld [vmem:[%s7380_s4] ss:$0 sm:$0xff] }
 0x22f   : > { %v3740_v40 = vmax.f32 %v3708_v14, 0.0  ;;  %v5788_v38 = vadd.f32 %v3632_v36, %v7204_v60  ;;  %5750 = vmatmul.mubr.bf16.gmra.mrb[56].mxu1 %v3757_v16 }
 0x230   : > { %v3711_v54 = vadd.f32 %v5787_v10, %v7209_v0 }
 0x231   : > { %v3710_v56 = vadd.f32 %v5788_v38, %v7209_v0  ;;  %v3758_v45 = vpack.c.bf16 %v3741_v34, %v3740_v40 }
 0x232   : > { %v3743_v49 = vmax.f32 %v3711_v54, 0.0 }
 0x233   : > { %v3742_v51 = vmax.f32 %v3710_v56, 0.0  ;;  %5753 = vmatprep.mubr.bf16.mxu1 %v3758_v45 }
 0x235   : > { %v3759_v53 = vpack.c.bf16 %v3743_v49, %v3742_v51 }
 0x237   : > { %5754 = vmatmul.mubr.bf16.gmra.mrb[60].mxu1 %v3759_v53 }
 0x2d2   : > { %v5727_v55 = vpop.f32.mrb[32].mxu1 }
 0x2d3   : > { %v3874_v60 = vadd.f32 %v5727_v55, %v7269_v58  ;;  %v3865_v42 = vpop.f32.mrb[33].mxu1 }
 0x2d4   : > { %v3866_v62 = vadd.f32 %v7269_v58, %v3865_v42  ;;  %v5728_v8 = vpop.f32.mrb[34].mxu1 }
 0x2d5   : > { %v3877_v0 = vadd.f32 %v5728_v8, %v7269_v58  ;;  %v3868_v2 = vpop.f32.mrb[35].mxu1  ;;  %v3994_v57 = vmax.f32 %v3874_v60, 0.0 }
 0x2d6   : > { %v3869_v4 = vadd.f32 %v7269_v58, %v3868_v2  ;;  %v3992_v59 = vmax.f32 %v3866_v62, 0.0 }
 0x2d7   : > { %v3995_v6 = vmax.f32 %v3877_v0, 0.0 }
 0x2d8   : > { %v3993_v9 = vmax.f32 %v3869_v4, 0.0 }
 0x2d9   : > { %v4851_v41 = vpack.c.bf16 %v3995_v6, %v3994_v57 }
 0x2da   : > { %v4846_v39 = vpack.c.bf16 %v3993_v9, %v3992_v59  ;;  %v5731_v46 = vpop.f32.mrb[36].mxu1 }
 0x2db   : > { %4923 = vst [vmem:[%s7278_s25 + $0x8] sm:$0xff] %v4851_v41   ;;  %v3890_v37 = vadd.f32 %v5731_v46, %v7269_v58  ;;  %v3881_v35 = vpop.f32.mrb[37].mxu1 }
 0x2dc   : > { %4847 = vst [vmem:[%s7278_s25] sm:$0xff] %v4846_v39   ;;  %v3882_v31 = vadd.f32 %v7269_v58, %v3881_v35  ;;  %v5732_v61 = vpop.f32.mrb[38].mxu1 }
 0x2dd   : > { %v3893_v29 = vadd.f32 %v5732_v61, %v7269_v58  ;;  %v3884_v63 = vpop.f32.mrb[39].mxu1  ;;  %v3998_v27 = vmax.f32 %v3890_v37, 0.0 }
 0x2de   : > { %v3885_v47 = vadd.f32 %v7269_v58, %v3884_v63  ;;  %v3996_v25 = vmax.f32 %v3882_v31, 0.0 }
 0x2df   : > { %v3999_v43 = vmax.f32 %v3893_v29, 0.0 }
 0x2e0   : > { %v3997_v23 = vmax.f32 %v3885_v47, 0.0 }
 0x2e1   : > { %v4861_v33 = vpack.c.bf16 %v3999_v43, %v3998_v27 }
 0x2e2   : > { %v4856_v21 = vpack.c.bf16 %v3997_v23, %v3996_v25  ;;  %v5735_v19 = vpop.f32.mrb[40].mxu1 }
 0x2e3   : > { %4925 = vst [vmem:[%s7278_s25 + $0x18] sm:$0xff] %v4861_v33   ;;  %v3906_v1 = vadd.f32 %v5735_v19, %v7269_v58  ;;  %v3897_v44 = vpop.f32.mrb[41].mxu1 }
 0x2e4   : > { %4924 = vst [vmem:[%s7278_s25 + $0x10] sm:$0xff] %v4856_v21   ;;  %v3898_v17 = vadd.f32 %v7269_v58, %v3897_v44  ;;  %v5736_v48 = vpop.f32.mrb[42].mxu1 }
 0x2e5   : > { %v3909_v3 = vadd.f32 %v5736_v48, %v7269_v58  ;;  %v3900_v15 = vpop.f32.mrb[43].mxu1  ;;  %v4002_v13 = vmax.f32 %v3906_v1, 0.0 }
 0x2e6   : > { %v3901_v11 = vadd.f32 %v7269_v58, %v3900_v15  ;;  %v4000_v26 = vmax.f32 %v3898_v17, 0.0 }
 0x2e7   : > { %v4003_v28 = vmax.f32 %v3909_v3, 0.0 }
 0x2e8   : > { %v4001_v12 = vmax.f32 %v3901_v11, 0.0 }
 0x2e9   : > { %v4871_v24 = vpack.c.bf16 %v4003_v28, %v4002_v13 }
 0x2ea   : > { %v4866_v18 = vpack.c.bf16 %v4001_v12, %v4000_v26  ;;  %v5739_v5 = vpop.f32.mrb[44].mxu1 }
 0x2eb   : > { %4927 = vst [vmem:[%s7278_s25 + $0x28] sm:$0xff] %v4871_v24   ;;  %v3922_v22 = vadd.f32 %v5739_v5, %v7269_v58  ;;  %v3913_v7 = vpop.f32.mrb[45].mxu1 }
 0x2ec   : > { %4926 = vst [vmem:[%s7278_s25 + $0x20] sm:$0xff] %v4866_v18   ;;  %v3914_v20 = vadd.f32 %v7269_v58, %v3913_v7  ;;  %v5740_v30 = vpop.f32.mrb[46].mxu1 }
 0x2ed   : > { %v3925_v32 = vadd.f32 %v5740_v30, %v7269_v58  ;;  %v3916_v50 = vpop.f32.mrb[47].mxu1  ;;  %v4006_v52 = vmax.f32 %v3922_v22, 0.0 }
 0x2ee   : > { %v3917_v14 = vadd.f32 %v7269_v58, %v3916_v50  ;;  %v4004_v34 = vmax.f32 %v3914_v20, 0.0 }
 0x2ef   : > { %v4007_v16 = vmax.f32 %v3925_v32, 0.0 }
 0x2f0   : > { %v4005_v10 = vmax.f32 %v3917_v14, 0.0 }
 0x2f1   : > { %v4881_v36 = vpack.c.bf16 %v4007_v16, %v4006_v52 }
 0x2f2   : > { %v4876_v40 = vpack.c.bf16 %v4005_v10, %v4004_v34  ;;  %v5743_v38 = vpop.f32.mrb[48].mxu1 }
 0x2f3   : > { %4929 = vst [vmem:[%s7278_s25 + $0x38] sm:$0xff] %v4881_v36   ;;  %v3938_v54 = vadd.f32 %v5743_v38, %v7269_v58  ;;  %v3929_v56 = vpop.f32.mrb[49].mxu1 }
 0x2f4   : > { %4928 = vst [vmem:[%s7278_s25 + $0x30] sm:$0xff] %v4876_v40   ;;  %v3930_v45 = vadd.f32 %v7269_v58, %v3929_v56  ;;  %v5744_v49 = vpop.f32.mrb[50].mxu1 }
 0x2f5   : > { %v3941_v51 = vadd.f32 %v5744_v49, %v7269_v58  ;;  %v3932_v53 = vpop.f32.mrb[51].mxu1  ;;  %v4010_v60 = vmax.f32 %v3938_v54, 0.0 }
 0x2f6   : > { %v3933_v55 = vadd.f32 %v7269_v58, %v3932_v53  ;;  %v4008_v62 = vmax.f32 %v3930_v45, 0.0 }
 0x2f7   : > { %v4011_v42 = vmax.f32 %v3941_v51, 0.0 }
 0x2f8   : > { %v4009_v8 = vmax.f32 %v3933_v55, 0.0 }
 0x2f9   : > { %v4891_v0 = vpack.c.bf16 %v4011_v42, %v4010_v60 }
 0x2fa   : > { %v4886_v2 = vpack.c.bf16 %v4009_v8, %v4008_v62  ;;  %v5747_v4 = vpop.f32.mrb[52].mxu1 }
 0x2fb   : > { %4931 = vst [vmem:[%s7278_s25 + $0x48] sm:$0xff] %v4891_v0   ;;  %v3954_v57 = vadd.f32 %v5747_v4, %v7269_v58  ;;  %v3945_v6 = vpop.f32.mrb[53].mxu1 }
 0x2fc   : > { %4930 = vst [vmem:[%s7278_s25 + $0x40] sm:$0xff] %v4886_v2   ;;  %v3946_v59 = vadd.f32 %v7269_v58, %v3945_v6  ;;  %v5748_v9 = vpop.f32.mrb[54].mxu1 }
 0x2fd   : > { %v3957_v41 = vadd.f32 %v5748_v9, %v7269_v58  ;;  %v3948_v39 = vpop.f32.mrb[55].mxu1  ;;  %v4014_v37 = vmax.f32 %v3954_v57, 0.0 }
 0x2fe   : > { %v3949_v46 = vadd.f32 %v7269_v58, %v3948_v39  ;;  %v4012_v31 = vmax.f32 %v3946_v59, 0.0 }
 0x2ff   : > { %v4015_v35 = vmax.f32 %v3957_v41, 0.0 }
 0x300   : > { %v4013_v61 = vmax.f32 %v3949_v46, 0.0 }
 0x301   : > { %v4901_v29 = vpack.c.bf16 %v4015_v35, %v4014_v37 }
 0x302   : > { %v4896_v63 = vpack.c.bf16 %v4013_v61, %v4012_v31  ;;  %v5751_v47 = vpop.f32.mrb[56].mxu1 }
 0x303   : > { %4933 = vst [vmem:[%s7278_s25 + $0x58] sm:$0xff] %v4901_v29   ;;  %v3970_v27 = vadd.f32 %v5751_v47, %v7269_v58  ;;  %v3961_v43 = vpop.f32.mrb[57].mxu1 }
 0x304   : > { %4932 = vst [vmem:[%s7278_s25 + $0x50] sm:$0xff] %v4896_v63   ;;  %v3962_v25 = vadd.f32 %v7269_v58, %v3961_v43  ;;  %v5752_v23 = vpop.f32.mrb[58].mxu1 }
 0x305   : > { %v3973_v33 = vadd.f32 %v5752_v23, %v7269_v58  ;;  %v3964_v21 = vpop.f32.mrb[59].mxu1  ;;  %v4018_v1 = vmax.f32 %v3970_v27, 0.0 }
 0x306   : > { %v3965_v19 = vadd.f32 %v7269_v58, %v3964_v21  ;;  %v4016_v17 = vmax.f32 %v3962_v25, 0.0 }
 0x307   : > { %v4019_v44 = vmax.f32 %v3973_v33, 0.0 }
 0x308   : > { %v4017_v48 = vmax.f32 %v3965_v19, 0.0 }
 0x309   : > { %v4911_v3 = vpack.c.bf16 %v4019_v44, %v4018_v1 }
 0x30a   : > { %v4906_v15 = vpack.c.bf16 %v4017_v48, %v4016_v17  ;;  %v5755_v11 = vpop.f32.mrb[60].mxu1 }
 0x30b   : > { %4935 = vst [vmem:[%s7278_s25 + $0x68] sm:$0xff] %v4911_v3   ;;  %v3986_v13 = vadd.f32 %v5755_v11, %v7269_v58  ;;  %v3977_v28 = vpop.f32.mrb[61].mxu1 }
 0x30c   : > { %4934 = vst [vmem:[%s7278_s25 + $0x60] sm:$0xff] %v4906_v15   ;;  %v3978_v26 = vadd.f32 %v7269_v58, %v3977_v28  ;;  %v5756_v12 = vpop.f32.mrb[62].mxu1 }
 0x30d   : > { %v3989_v24 = vadd.f32 %v5756_v12, %v7269_v58  ;;  %v3980_v18 = vpop.f32.mrb[63].mxu1  ;;  %v4022_v22 = vmax.f32 %v3986_v13, 0.0 }
 0x30e   : > { %v3981_v5 = vadd.f32 %v7269_v58, %v3980_v18  ;;  %v4020_v20 = vmax.f32 %v3978_v26, 0.0 }
 0x30f   : > { %v4023_v7 = vmax.f32 %v3989_v24, 0.0 }
 0x310   : > { %v4021_v30 = vmax.f32 %v3981_v5, 0.0 }
 0x311   : > { %v4921_v32 = vpack.c.bf16 %v4023_v7, %v4022_v22 }
 0x312   : > { %v4916_v50 = vpack.c.bf16 %v4021_v30, %v4020_v20 }
 0x313   : > { %4937 = vst [vmem:[%s7278_s25 + $0x78] sm:$0xff] %v4921_v32  }
 0x314   : > { %4936 = vst [vmem:[%s7278_s25 + $0x70] sm:$0xff] %v4916_v50  }
 0x315   : > { %6076 = shalt.err (!%p6073_p3)
}
 0x316   : > { %s6077_s12 = scalar_lea.hbm %s7327_s8, 2048  ;;  %s6081_s15 = scalar_lea.hbm %s7381_s5, 4096 }
 0x317   : > { %p6078_p4 = scmp.ne.s32.totalorder %s7327_s8, %s6077_s12  ;;  %p6082_p9 = scmp.lt.u32.totalorder %s7327_s8, %s7381_s5 }
 0x318   : > { %p6083_p10 = scmp.lt.u32.totalorder %s6081_s15, %s6077_s12  ;;  %p6085_p12 = scmp.lt.u32.totalorder %s6077_s12, %s7327_s8 }
 0x319   : > { %p6079_p7 = pnand %p6078_p4, %p6198_p5 }
 0x31a   : > { %p6084_p11 = por %p6083_p10, %p6082_p9 }
 0x31b   : > { %p6080_p8 = pneg %p6079_p7 }
 0x31c   : > { %p6086_p13 = por %p6085_p12, %p6084_p11 }
 0x31e   : > { %p6087_p0 = pnand %p6086_p13, %p6080_p8 }
 0x320   : > { %6090 = shalt.err (!%p6087_p0)
}
 0x321   : > { %s6128_s25 = smov 64   ;;  %s6129_s26 = smov 4  }
 0x322   : > { %6014 = dma.vmem_to_hbm [thread:$0]  (%p6198_p5), %s7329_s30, 2048, %s7327_s8, %s7335_s22, %s6128_s25, %s6128_s25, %s6129_s26  }
 0x323 PF: > { %p6020_p1 = scmp.ge.s32.totalorder %s6125_s21, 2  ;;  %s4213_s6 = sand.u32 1, %s6113_s18  }
 0x324   : > { %s4214_s7 = scalar_lea.sflag [#allocation3], %s4213_s6 }
 0x325   : > { %p6017_p2 = pnand %p6020_p1, %p6202_p6 }
 0x327   : > { %6108 = dma.done.wait (!%p6017_p2), %s4214_s7, 2048  }
 0x328   : > { %6110 = vsyncadd (!%p6017_p2), %s4214_s7, 4294965248  ;;  %p15_p3 = scmp.ge.s32.totalorder %s6185_s24, 4   ;;  %s7489_s18 = smov %s6117_s19 }
 0x329   : > { %s7490_s19 = smov %s6121_s20  ;;  %s7491_s20 = smov %s6196_s27 }
 0x32a   : > { %s7492_s21 = smov %s6185_s24  ;;  %17 = sbr.rel (!%p15_p3) target bundleno = 3 (0x3), region = 85 }
 0x331   :  { %4219 = vsyncpa [#allocation3], 1 }
 0x332   :  { %4221 = vsyncpa [#allocation3 + $0x1], 1 }

</bundles_post_ra>
